<compile_context>
chip_gen: v7x
topology: tpu7x:2x2x1
jax: 0.10.0
libtpu: 0.0.40
codegen_flags: <defaults>
</compile_context>

<pallas_src>
import functools

import numpy as np
import jax
import jax.numpy as jnp
from jax import lax
from jax.experimental import pallas as pl
from jax.experimental.pallas import tpu as pltpu


def _cagke_kernel(x_ref, sigma_smem, w_smem, wrow_ref, noise_ref, out_ref, *,
                  noise_sigma, norm):
    # x_ref:      (1, T, 1) event column for this batch row (VMEM)
    # sigma_smem: (D,) f32 learnable_sigma  (SMEM scalars)
    # w_smem:     (D,) f32 learnable_weight (SMEM scalars)
    # wrow_ref:   (1, D) f32 learnable_weight, lane-dense (VMEM, softmax denominator)
    # noise_ref:  (1, 1, T) f32
    # out_ref:    (1, 1, T) f32
    T = x_ref.shape[1]
    T2 = 2 * T
    D = sigma_smem.shape[0]
    G = T // 8

    # ---- wrapped displacement grid: rk0[b, k] will hold the Gaussian at displacement
    #      (j - i - 1) for the group-0 window (i = b, j = k); the top lanes wrap to the
    #      negative displacements needed by later (rolled) groups.
    kk = lax.broadcasted_iota(jnp.int32, (8, T2), 1)
    bb = lax.broadcasted_iota(jnp.int32, (8, T2), 0)
    base = kk - 1 - bb
    disp = jnp.where(kk <= T, base, base - T2).astype(jnp.float32)
    d2 = disp * disp

    # ---- per-scale coefficients on the scalar path (SMEM reads; +,-,*,/ and selects only)
    wvals = [w_smem[d] for d in range(D)]
    svals = [sigma_smem[d] for d in range(D)]
    wmax = wvals[0]
    for d in range(1, D):
        wmax = jnp.where(wvals[d] > wmax, wvals[d], wmax)

    # ---- mixed (softmax-numerator weighted) Toeplitz block, built on the EUP
    rk = None
    for d in range(D):
        s = jnp.where(svals[d] < 0.0, -svals[d], svals[d])        # |sigma_d|
        beta = 1.0 / (2.0 * s * s)                                # 1 / (2 sigma_d^2)
        alpha = 0.39894228 / s
        shift = wvals[d] - wmax                                   # log softmax numerator
        term = alpha * jnp.exp(shift - d2 * beta)                 # exp(w_d - wmax) folded in
        rk = term if rk is None else rk + term                    # (8, 2T)

    # ---- softmax denominator from the lane-dense (1, D) weight row
    z = jnp.sum(jnp.exp(wrow_ref[...] - wmax), axis=1, keepdims=True)   # (1, 1)

    # ---- event mask: one (T,1)->(T,T) lane-broadcast; per-group slices are aligned/free
    mask_col = (x_ref[0] > 0.5).astype(jnp.float32)               # (T, 1)
    mask_slab = jnp.broadcast_to(mask_col, (T, T))                # (T, T)

    # ---- shift-and-accumulate: (8, T) partials; the kernel block advances by a lane
    #      roll of 8 per group (rolls and adds form independent XLU / VPU chains).
    acc = None
    for a in range(G):
        contrib = mask_slab[8 * a:8 * a + 8, :] * rk[:, :T]       # aligned slices, VPU mul
        acc = contrib if acc is None else acc + contrib
        if a + 1 < G:
            rk = pltpu.roll(rk, shift=8, axis=1)

    pc = jnp.sum(acc, axis=0, keepdims=True)                      # single sublane reduce
    pc = pc * (1.0 / z) + noise_sigma * noise_ref[0]              # softmax mix + noise

    if norm:
        mn = jnp.min(pc)
        mx = jnp.max(pc)
        out_ref[0] = (pc - mn) * (1.0 / (mx - mn))                # exact scalar reciprocal
    else:
        out_ref[0] = pc


def cagke_learnable_forward(x, sigma, weight, noise, *, noise_sigma=0.01, norm=True):
    """x: (B, T) 0/1 events; sigma: (D,); weight: (1, D); noise: (B, T) -> (B, T).

    Each row is processed exactly like CAGKE_learnable.forward on a (1, T) series;
    B rows share one pallas_call (grid over batch, marked "parallel")."""
    x = jnp.asarray(x, jnp.float32)
    if x.ndim == 1:
        x = x[None, :]
    B, T = x.shape
    D = int(jnp.asarray(sigma).shape[-1])
    if T % 8 != 0:
        raise ValueError("in_length must be a multiple of 8 for this kernel")

    # Layout plumbing only: column layout for x (free sublane group slices in-kernel),
    # lane-dense rows for noise / output, params duplicated as SMEM scalars + (1, D) row.
    x3 = x.reshape(B, T, 1)
    noise3 = jnp.asarray(noise, jnp.float32).reshape(B, 1, T)
    sigma_s = jnp.asarray(sigma, jnp.float32).reshape(D)
    weight_s = jnp.asarray(weight, jnp.float32).reshape(D)
    weight_row = jnp.asarray(weight, jnp.float32).reshape(1, D)

    kernel = functools.partial(_cagke_kernel, noise_sigma=float(noise_sigma), norm=norm)
    cost = pl.CostEstimate(
        flops=B * (2 * T * T + 10 * D * 2 * T),
        transcendentals=B * (D * 8 * 2 * T + D),
        bytes_accessed=4 * (3 * B * T + 3 * D),
    )
    grid_spec = pltpu.PrefetchScalarGridSpec(
        num_scalar_prefetch=0,
        grid=(B,),
        in_specs=[
            pl.BlockSpec((1, T, 1), lambda b: (b, 0, 0)),                  # x column
            pl.BlockSpec(memory_space=pltpu.MemorySpace.SMEM),             # sigma (D,)
            pl.BlockSpec(memory_space=pltpu.MemorySpace.SMEM),             # weight (D,)
            pl.BlockSpec(memory_space=pltpu.MemorySpace.VMEM),             # weight row (1, D)
            pl.BlockSpec((1, 1, T), lambda b: (b, 0, 0)),                  # noise row
        ],
        out_specs=pl.BlockSpec((1, 1, T), lambda b: (b, 0, 0)),
    )
    out3 = pl.pallas_call(
        kernel,
        out_shape=jax.ShapeDtypeStruct((B, 1, T), jnp.float32),
        grid_spec=grid_spec,
        compiler_params=pltpu.CompilerParams(dimension_semantics=("parallel",)),
        cost_estimate=cost,
    )(x3, sigma_s, weight_s, weight_row, noise3)
    return out3.reshape(B, T)


def _reference(x, sigma, weight, noise, noise_sigma=0.01, norm=True):
    """Pure-JAX mirror of the torch forward, applied per row (sanity check)."""
    T = x.shape[1]
    mask = (x > 0.5).astype(jnp.float32)                          # (B, T)
    idx = jnp.arange(T, dtype=jnp.float32)
    diff = idx[None, :] - idx[:, None] - 1.0                      # (T, T): j - i - 1
    s = jnp.abs(sigma)[:, None, None]                             # (D, 1, 1)
    g = 0.39894228 / s * jnp.exp(-(diff[None] ** 2) / (2.0 * s * s))   # (D, T, T)
    embed = jnp.einsum("bt,dtj->bdj", mask, g)                    # (B, D, T)
    sw = jax.nn.softmax(weight, axis=1)                           # (1, D)
    pc = jnp.einsum("od,bdj->bj", sw, embed) + noise_sigma * noise
    if norm:
        mn = jnp.min(pc, axis=1, keepdims=True)
        mx = jnp.max(pc, axis=1, keepdims=True)
        return (pc - mn) / (mx - mn)
    return pc


if __name__ == "__main__":
    T = 128   # in_length
    D = 8     # embed_dim
    B = 2     # independent (1, T) sequences batched into one call

    key = jax.random.PRNGKey(0)
    kx, kn, kw = jax.random.split(key, 3)

    # discrete 0/1 event series, one per batch row
    x = (jax.random.uniform(kx, (B, T)) > 0.7).astype(jnp.float32)

    # parameters shaped like CAGKE_learnable.__init__ (weight perturbed as if trained,
    # so the softmax mixing path is genuinely exercised)
    sigma = jnp.linspace(0.4, 4.0, D).astype(jnp.float32)                       # (D,)
    weight = (jnp.ones((1, D)) + 0.25 * jax.random.normal(kw, (1, D))).astype(jnp.float32)

    # deterministic replacement for torch.randn(1, T) per row
    noise = jax.random.normal(kn, (B, T), jnp.float32)

    out = cagke_learnable_forward(x, sigma, weight, noise, noise_sigma=0.01, norm=True)
    out = jax.block_until_ready(out)

    ref = _reference(x, sigma, weight, noise, noise_sigma=0.01, norm=True)
    np.testing.assert_allclose(np.asarray(out), np.asarray(ref), rtol=2e-4, atol=2e-4)

    print("KERNEL_OK")
</pallas_src>

<mosaic_0001>
module attributes {stable_mosaic.version = 11 : i64} {
  func.func @_cagke_kernel(%arg0: i32, %arg1: memref<1x128x1xf32, #tpu.memory_space<vmem>>, %arg2: memref<8xf32, #tpu.memory_space<smem>>, %arg3: memref<8xf32, #tpu.memory_space<smem>>, %arg4: memref<1x8xf32, #tpu.memory_space<vmem>>, %arg5: memref<1x1x128xf32, #tpu.memory_space<vmem>>, %arg6: memref<1x1x128xf32, #tpu.memory_space<vmem>>) attributes {dimension_semantics = [#tpu.dimension_semantics<parallel>], iteration_bounds = array<i64: 2>, scalar_prefetch = 0 : i64, scratch_operands = 0 : i64, tpu.core_type = #tpu.core_type<tc>, window_params = [{transform_indices = @transform_0, window_bounds = array<i64: 1, 128, 1>}, {transform_indices = @transform_1, window_bounds = array<i64: 8>}, {transform_indices = @transform_2, window_bounds = array<i64: 8>}, {pipeline_mode = #tpu.pipeline_mode<synchronous>, transform_indices = @transform_3, window_bounds = array<i64: 1, 8>}, {transform_indices = @transform_4, window_bounds = array<i64: 1, 1, 128>}, {transform_indices = @transform_5, window_bounds = array<i64: 1, 1, 128>}]} {
    %0 = tpu.iota {dimensions = array<i32: 1>} : vector<8x256xi32>
    %1 = tpu.iota {dimensions = array<i32: 0>} : vector<8x256xi32>
    %c1_i32 = arith.constant 1 : i32
    %2 = vector.broadcast %c1_i32 : i32 to vector<8x256xi32>
    %3 = arith.subi %0, %2 : vector<8x256xi32>
    %4 = arith.subi %3, %1 : vector<8x256xi32>
    %c128_i32 = arith.constant 128 : i32
    %5 = vector.broadcast %c128_i32 : i32 to vector<8x256xi32>
    %6 = arith.cmpi sle, %0, %5 : vector<8x256xi32>
    %c256_i32 = arith.constant 256 : i32
    %7 = vector.broadcast %c256_i32 : i32 to vector<8x256xi32>
    %8 = arith.subi %4, %7 : vector<8x256xi32>
    %9 = arith.select %6, %4, %8 : vector<8x256xi1>, vector<8x256xi32>
    %10 = arith.sitofp %9 : vector<8x256xi32> to vector<8x256xf32>
    %11 = arith.mulf %10, %10 : vector<8x256xf32>
    %c0 = arith.constant 0 : index
    %12 = memref.load %arg3[%c0] : memref<8xf32, #tpu.memory_space<smem>>
    %c1 = arith.constant 1 : index
    %13 = memref.load %arg3[%c1] : memref<8xf32, #tpu.memory_space<smem>>
    %c2 = arith.constant 2 : index
    %14 = memref.load %arg3[%c2] : memref<8xf32, #tpu.memory_space<smem>>
    %c3 = arith.constant 3 : index
    %15 = memref.load %arg3[%c3] : memref<8xf32, #tpu.memory_space<smem>>
    %c4 = arith.constant 4 : index
    %16 = memref.load %arg3[%c4] : memref<8xf32, #tpu.memory_space<smem>>
    %c5 = arith.constant 5 : index
    %17 = memref.load %arg3[%c5] : memref<8xf32, #tpu.memory_space<smem>>
    %c6 = arith.constant 6 : index
    %18 = memref.load %arg3[%c6] : memref<8xf32, #tpu.memory_space<smem>>
    %c7 = arith.constant 7 : index
    %19 = memref.load %arg3[%c7] : memref<8xf32, #tpu.memory_space<smem>>
    %c0_0 = arith.constant 0 : index
    %20 = memref.load %arg2[%c0_0] : memref<8xf32, #tpu.memory_space<smem>>
    %c1_1 = arith.constant 1 : index
    %21 = memref.load %arg2[%c1_1] : memref<8xf32, #tpu.memory_space<smem>>
    %c2_2 = arith.constant 2 : index
    %22 = memref.load %arg2[%c2_2] : memref<8xf32, #tpu.memory_space<smem>>
    %c3_3 = arith.constant 3 : index
    %23 = memref.load %arg2[%c3_3] : memref<8xf32, #tpu.memory_space<smem>>
    %c4_4 = arith.constant 4 : index
    %24 = memref.load %arg2[%c4_4] : memref<8xf32, #tpu.memory_space<smem>>
    %c5_5 = arith.constant 5 : index
    %25 = memref.load %arg2[%c5_5] : memref<8xf32, #tpu.memory_space<smem>>
    %c6_6 = arith.constant 6 : index
    %26 = memref.load %arg2[%c6_6] : memref<8xf32, #tpu.memory_space<smem>>
    %c7_7 = arith.constant 7 : index
    %27 = memref.load %arg2[%c7_7] : memref<8xf32, #tpu.memory_space<smem>>
    %28 = arith.cmpf ogt, %13, %12 : f32
    %29 = arith.select %28, %13, %12 : f32
    %30 = arith.cmpf ogt, %14, %29 : f32
    %31 = arith.select %30, %14, %29 : f32
    %32 = arith.cmpf ogt, %15, %31 : f32
    %33 = arith.select %32, %15, %31 : f32
    %34 = arith.cmpf ogt, %16, %33 : f32
    %35 = arith.select %34, %16, %33 : f32
    %36 = arith.cmpf ogt, %17, %35 : f32
    %37 = arith.select %36, %17, %35 : f32
    %38 = arith.cmpf ogt, %18, %37 : f32
    %39 = arith.select %38, %18, %37 : f32
    %40 = arith.cmpf ogt, %19, %39 : f32
    %41 = arith.select %40, %19, %39 : f32
    %cst = arith.constant 0.000000e+00 : f32
    %42 = arith.cmpf olt, %20, %cst : f32
    %cst_8 = arith.constant 0.000000e+00 : f32
    %43 = arith.subf %cst_8, %20 : f32
    %44 = arith.select %42, %43, %20 : f32
    %cst_9 = arith.constant 2.000000e+00 : f32
    %45 = arith.mulf %cst_9, %44 : f32
    %46 = arith.mulf %45, %44 : f32
    %cst_10 = arith.constant 1.000000e+00 : f32
    %47 = arith.divf %cst_10, %46 : f32
    %cst_11 = arith.constant 0.398942292 : f32
    %48 = arith.divf %cst_11, %44 : f32
    %49 = arith.subf %12, %41 : f32
    %50 = vector.broadcast %47 : f32 to vector<8x256xf32>
    %51 = arith.mulf %11, %50 : vector<8x256xf32>
    %52 = vector.broadcast %49 : f32 to vector<8x256xf32>
    %53 = arith.subf %52, %51 : vector<8x256xf32>
    %54 = math.exp %53 : vector<8x256xf32>
    %55 = vector.broadcast %48 : f32 to vector<8x256xf32>
    %56 = arith.mulf %55, %54 : vector<8x256xf32>
    %cst_12 = arith.constant 0.000000e+00 : f32
    %57 = arith.cmpf olt, %21, %cst_12 : f32
    %cst_13 = arith.constant 0.000000e+00 : f32
    %58 = arith.subf %cst_13, %21 : f32
    %59 = arith.select %57, %58, %21 : f32
    %cst_14 = arith.constant 2.000000e+00 : f32
    %60 = arith.mulf %cst_14, %59 : f32
    %61 = arith.mulf %60, %59 : f32
    %cst_15 = arith.constant 1.000000e+00 : f32
    %62 = arith.divf %cst_15, %61 : f32
    %cst_16 = arith.constant 0.398942292 : f32
    %63 = arith.divf %cst_16, %59 : f32
    %64 = arith.subf %13, %41 : f32
    %65 = vector.broadcast %62 : f32 to vector<8x256xf32>
    %66 = arith.mulf %11, %65 : vector<8x256xf32>
    %67 = vector.broadcast %64 : f32 to vector<8x256xf32>
    %68 = arith.subf %67, %66 : vector<8x256xf32>
    %69 = math.exp %68 : vector<8x256xf32>
    %70 = vector.broadcast %63 : f32 to vector<8x256xf32>
    %71 = arith.mulf %70, %69 : vector<8x256xf32>
    %72 = arith.addf %56, %71 : vector<8x256xf32>
    %cst_17 = arith.constant 0.000000e+00 : f32
    %73 = arith.cmpf olt, %22, %cst_17 : f32
    %cst_18 = arith.constant 0.000000e+00 : f32
    %74 = arith.subf %cst_18, %22 : f32
    %75 = arith.select %73, %74, %22 : f32
    %cst_19 = arith.constant 2.000000e+00 : f32
    %76 = arith.mulf %cst_19, %75 : f32
    %77 = arith.mulf %76, %75 : f32
    %cst_20 = arith.constant 1.000000e+00 : f32
    %78 = arith.divf %cst_20, %77 : f32
    %cst_21 = arith.constant 0.398942292 : f32
    %79 = arith.divf %cst_21, %75 : f32
    %80 = arith.subf %14, %41 : f32
    %81 = vector.broadcast %78 : f32 to vector<8x256xf32>
    %82 = arith.mulf %11, %81 : vector<8x256xf32>
    %83 = vector.broadcast %80 : f32 to vector<8x256xf32>
    %84 = arith.subf %83, %82 : vector<8x256xf32>
    %85 = math.exp %84 : vector<8x256xf32>
    %86 = vector.broadcast %79 : f32 to vector<8x256xf32>
    %87 = arith.mulf %86, %85 : vector<8x256xf32>
    %88 = arith.addf %72, %87 : vector<8x256xf32>
    %cst_22 = arith.constant 0.000000e+00 : f32
    %89 = arith.cmpf olt, %23, %cst_22 : f32
    %cst_23 = arith.constant 0.000000e+00 : f32
    %90 = arith.subf %cst_23, %23 : f32
    %91 = arith.select %89, %90, %23 : f32
    %cst_24 = arith.constant 2.000000e+00 : f32
    %92 = arith.mulf %cst_24, %91 : f32
    %93 = arith.mulf %92, %91 : f32
    %cst_25 = arith.constant 1.000000e+00 : f32
    %94 = arith.divf %cst_25, %93 : f32
    %cst_26 = arith.constant 0.398942292 : f32
    %95 = arith.divf %cst_26, %91 : f32
    %96 = arith.subf %15, %41 : f32
    %97 = vector.broadcast %94 : f32 to vector<8x256xf32>
    %98 = arith.mulf %11, %97 : vector<8x256xf32>
    %99 = vector.broadcast %96 : f32 to vector<8x256xf32>
    %100 = arith.subf %99, %98 : vector<8x256xf32>
    %101 = math.exp %100 : vector<8x256xf32>
    %102 = vector.broadcast %95 : f32 to vector<8x256xf32>
    %103 = arith.mulf %102, %101 : vector<8x256xf32>
    %104 = arith.addf %88, %103 : vector<8x256xf32>
    %cst_27 = arith.constant 0.000000e+00 : f32
    %105 = arith.cmpf olt, %24, %cst_27 : f32
    %cst_28 = arith.constant 0.000000e+00 : f32
    %106 = arith.subf %cst_28, %24 : f32
    %107 = arith.select %105, %106, %24 : f32
    %cst_29 = arith.constant 2.000000e+00 : f32
    %108 = arith.mulf %cst_29, %107 : f32
    %109 = arith.mulf %108, %107 : f32
    %cst_30 = arith.constant 1.000000e+00 : f32
    %110 = arith.divf %cst_30, %109 : f32
    %cst_31 = arith.constant 0.398942292 : f32
    %111 = arith.divf %cst_31, %107 : f32
    %112 = arith.subf %16, %41 : f32
    %113 = vector.broadcast %110 : f32 to vector<8x256xf32>
    %114 = arith.mulf %11, %113 : vector<8x256xf32>
    %115 = vector.broadcast %112 : f32 to vector<8x256xf32>
    %116 = arith.subf %115, %114 : vector<8x256xf32>
    %117 = math.exp %116 : vector<8x256xf32>
    %118 = vector.broadcast %111 : f32 to vector<8x256xf32>
    %119 = arith.mulf %118, %117 : vector<8x256xf32>
    %120 = arith.addf %104, %119 : vector<8x256xf32>
    %cst_32 = arith.constant 0.000000e+00 : f32
    %121 = arith.cmpf olt, %25, %cst_32 : f32
    %cst_33 = arith.constant 0.000000e+00 : f32
    %122 = arith.subf %cst_33, %25 : f32
    %123 = arith.select %121, %122, %25 : f32
    %cst_34 = arith.constant 2.000000e+00 : f32
    %124 = arith.mulf %cst_34, %123 : f32
    %125 = arith.mulf %124, %123 : f32
    %cst_35 = arith.constant 1.000000e+00 : f32
    %126 = arith.divf %cst_35, %125 : f32
    %cst_36 = arith.constant 0.398942292 : f32
    %127 = arith.divf %cst_36, %123 : f32
    %128 = arith.subf %17, %41 : f32
    %129 = vector.broadcast %126 : f32 to vector<8x256xf32>
    %130 = arith.mulf %11, %129 : vector<8x256xf32>
    %131 = vector.broadcast %128 : f32 to vector<8x256xf32>
    %132 = arith.subf %131, %130 : vector<8x256xf32>
    %133 = math.exp %132 : vector<8x256xf32>
    %134 = vector.broadcast %127 : f32 to vector<8x256xf32>
    %135 = arith.mulf %134, %133 : vector<8x256xf32>
    %136 = arith.addf %120, %135 : vector<8x256xf32>
    %cst_37 = arith.constant 0.000000e+00 : f32
    %137 = arith.cmpf olt, %26, %cst_37 : f32
    %cst_38 = arith.constant 0.000000e+00 : f32
    %138 = arith.subf %cst_38, %26 : f32
    %139 = arith.select %137, %138, %26 : f32
    %cst_39 = arith.constant 2.000000e+00 : f32
    %140 = arith.mulf %cst_39, %139 : f32
    %141 = arith.mulf %140, %139 : f32
    %cst_40 = arith.constant 1.000000e+00 : f32
    %142 = arith.divf %cst_40, %141 : f32
    %cst_41 = arith.constant 0.398942292 : f32
    %143 = arith.divf %cst_41, %139 : f32
    %144 = arith.subf %18, %41 : f32
    %145 = vector.broadcast %142 : f32 to vector<8x256xf32>
    %146 = arith.mulf %11, %145 : vector<8x256xf32>
    %147 = vector.broadcast %144 : f32 to vector<8x256xf32>
    %148 = arith.subf %147, %146 : vector<8x256xf32>
    %149 = math.exp %148 : vector<8x256xf32>
    %150 = vector.broadcast %143 : f32 to vector<8x256xf32>
    %151 = arith.mulf %150, %149 : vector<8x256xf32>
    %152 = arith.addf %136, %151 : vector<8x256xf32>
    %cst_42 = arith.constant 0.000000e+00 : f32
    %153 = arith.cmpf olt, %27, %cst_42 : f32
    %cst_43 = arith.constant 0.000000e+00 : f32
    %154 = arith.subf %cst_43, %27 : f32
    %155 = arith.select %153, %154, %27 : f32
    %cst_44 = arith.constant 2.000000e+00 : f32
    %156 = arith.mulf %cst_44, %155 : f32
    %157 = arith.mulf %156, %155 : f32
    %cst_45 = arith.constant 1.000000e+00 : f32
    %158 = arith.divf %cst_45, %157 : f32
    %cst_46 = arith.constant 0.398942292 : f32
    %159 = arith.divf %cst_46, %155 : f32
    %160 = arith.subf %19, %41 : f32
    %161 = vector.broadcast %158 : f32 to vector<8x256xf32>
    %162 = arith.mulf %11, %161 : vector<8x256xf32>
    %163 = vector.broadcast %160 : f32 to vector<8x256xf32>
    %164 = arith.subf %163, %162 : vector<8x256xf32>
    %165 = math.exp %164 : vector<8x256xf32>
    %166 = vector.broadcast %159 : f32 to vector<8x256xf32>
    %167 = arith.mulf %166, %165 : vector<8x256xf32>
    %168 = arith.addf %152, %167 : vector<8x256xf32>
    %c0_47 = arith.constant 0 : index
    %c0_48 = arith.constant 0 : index
    %169 = vector.load %arg4[%c0_47, %c0_48] : memref<1x8xf32, #tpu.memory_space<vmem>>, vector<1x8xf32>
    %170 = vector.broadcast %41 : f32 to vector<1x8xf32>
    %171 = arith.subf %169, %170 : vector<1x8xf32>
    %172 = math.exp %171 : vector<1x8xf32>
    %cst_49 = arith.constant dense<0.000000e+00> : vector<1xf32>
    %173 = vector.multi_reduction <add>, %172, %cst_49 [1] : vector<1x8xf32> to vector<1xf32>
    %174 = vector.shape_cast %173 : vector<1xf32> to vector<1x1xf32>
    %c0_50 = arith.constant 0 : index
    %c0_51 = arith.constant 0 : index
    %c0_52 = arith.constant 0 : index
    %175 = vector.load %arg1[%c0_50, %c0_51, %c0_52] : memref<1x128x1xf32, #tpu.memory_space<vmem>>, vector<1x128x1xf32>
    %176 = vector.shape_cast %175 : vector<1x128x1xf32> to vector<128x1xf32>
    %cst_53 = arith.constant 5.000000e-01 : f32
    %177 = vector.broadcast %cst_53 : f32 to vector<128x1xf32>
    %178 = arith.cmpf ogt, %176, %177 : vector<128x1xf32>
    %179 = arith.extui %178 : vector<128x1xi1> to vector<128x1xi32>
    %180 = arith.sitofp %179 : vector<128x1xi32> to vector<128x1xf32>
    %181 = vector.shape_cast %180 : vector<128x1xf32> to vector<128x1xf32>
    %182 = vector.broadcast %181 : vector<128x1xf32> to vector<128x128xf32>
    %183 = vector.extract_strided_slice %182 {offsets = [0, 0], sizes = [8, 128], strides = [1, 1]} : vector<128x128xf32> to vector<8x128xf32>
    %184 = vector.extract_strided_slice %168 {offsets = [0, 0], sizes = [8, 128], strides = [1, 1]} : vector<8x256xf32> to vector<8x128xf32>
    %185 = arith.mulf %183, %184 : vector<8x128xf32>
    %c8_i32 = arith.constant 8 : i32
    %186 = tpu.dynamic_rotate %168 by %c8_i32 dim 1 : vector<8x256xf32>, i32 -> vector<8x256xf32>
    %187 = vector.extract_strided_slice %182 {offsets = [8, 0], sizes = [8, 128], strides = [1, 1]} : vector<128x128xf32> to vector<8x128xf32>
    %188 = vector.extract_strided_slice %186 {offsets = [0, 0], sizes = [8, 128], strides = [1, 1]} : vector<8x256xf32> to vector<8x128xf32>
    %189 = arith.mulf %187, %188 : vector<8x128xf32>
    %190 = arith.addf %185, %189 : vector<8x128xf32>
    %c8_i32_54 = arith.constant 8 : i32
    %191 = tpu.dynamic_rotate %186 by %c8_i32_54 dim 1 : vector<8x256xf32>, i32 -> vector<8x256xf32>
    %192 = vector.extract_strided_slice %182 {offsets = [16, 0], sizes = [8, 128], strides = [1, 1]} : vector<128x128xf32> to vector<8x128xf32>
    %193 = vector.extract_strided_slice %191 {offsets = [0, 0], sizes = [8, 128], strides = [1, 1]} : vector<8x256xf32> to vector<8x128xf32>
    %194 = arith.mulf %192, %193 : vector<8x128xf32>
    %195 = arith.addf %190, %194 : vector<8x128xf32>
    %c8_i32_55 = arith.constant 8 : i32
    %196 = tpu.dynamic_rotate %191 by %c8_i32_55 dim 1 : vector<8x256xf32>, i32 -> vector<8x256xf32>
    %197 = vector.extract_strided_slice %182 {offsets = [24, 0], sizes = [8, 128], strides = [1, 1]} : vector<128x128xf32> to vector<8x128xf32>
    %198 = vector.extract_strided_slice %196 {offsets = [0, 0], sizes = [8, 128], strides = [1, 1]} : vector<8x256xf32> to vector<8x128xf32>
    %199 = arith.mulf %197, %198 : vector<8x128xf32>
    %200 = arith.addf %195, %199 : vector<8x128xf32>
    %c8_i32_56 = arith.constant 8 : i32
    %201 = tpu.dynamic_rotate %196 by %c8_i32_56 dim 1 : vector<8x256xf32>, i32 -> vector<8x256xf32>
    %202 = vector.extract_strided_slice %182 {offsets = [32, 0], sizes = [8, 128], strides = [1, 1]} : vector<128x128xf32> to vector<8x128xf32>
    %203 = vector.extract_strided_slice %201 {offsets = [0, 0], sizes = [8, 128], strides = [1, 1]} : vector<8x256xf32> to vector<8x128xf32>
    %204 = arith.mulf %202, %203 : vector<8x128xf32>
    %205 = arith.addf %200, %204 : vector<8x128xf32>
    %c8_i32_57 = arith.constant 8 : i32
    %206 = tpu.dynamic_rotate %201 by %c8_i32_57 dim 1 : vector<8x256xf32>, i32 -> vector<8x256xf32>
    %207 = vector.extract_strided_slice %182 {offsets = [40, 0], sizes = [8, 128], strides = [1, 1]} : vector<128x128xf32> to vector<8x128xf32>
    %208 = vector.extract_strided_slice %206 {offsets = [0, 0], sizes = [8, 128], strides = [1, 1]} : vector<8x256xf32> to vector<8x128xf32>
    %209 = arith.mulf %207, %208 : vector<8x128xf32>
    %210 = arith.addf %205, %209 : vector<8x128xf32>
    %c8_i32_58 = arith.constant 8 : i32
    %211 = tpu.dynamic_rotate %206 by %c8_i32_58 dim 1 : vector<8x256xf32>, i32 -> vector<8x256xf32>
    %212 = vector.extract_strided_slice %182 {offsets = [48, 0], sizes = [8, 128], strides = [1, 1]} : vector<128x128xf32> to vector<8x128xf32>
    %213 = vector.extract_strided_slice %211 {offsets = [0, 0], sizes = [8, 128], strides = [1, 1]} : vector<8x256xf32> to vector<8x128xf32>
    %214 = arith.mulf %212, %213 : vector<8x128xf32>
    %215 = arith.addf %210, %214 : vector<8x128xf32>
    %c8_i32_59 = arith.constant 8 : i32
    %216 = tpu.dynamic_rotate %211 by %c8_i32_59 dim 1 : vector<8x256xf32>, i32 -> vector<8x256xf32>
    %217 = vector.extract_strided_slice %182 {offsets = [56, 0], sizes = [8, 128], strides = [1, 1]} : vector<128x128xf32> to vector<8x128xf32>
    %218 = vector.extract_strided_slice %216 {offsets = [0, 0], sizes = [8, 128], strides = [1, 1]} : vector<8x256xf32> to vector<8x128xf32>
    %219 = arith.mulf %217, %218 : vector<8x128xf32>
    %220 = arith.addf %215, %219 : vector<8x128xf32>
    %c8_i32_60 = arith.constant 8 : i32
    %221 = tpu.dynamic_rotate %216 by %c8_i32_60 dim 1 : vector<8x256xf32>, i32 -> vector<8x256xf32>
    %222 = vector.extract_strided_slice %182 {offsets = [64, 0], sizes = [8, 128], strides = [1, 1]} : vector<128x128xf32> to vector<8x128xf32>
    %223 = vector.extract_strided_slice %221 {offsets = [0, 0], sizes = [8, 128], strides = [1, 1]} : vector<8x256xf32> to vector<8x128xf32>
    %224 = arith.mulf %222, %223 : vector<8x128xf32>
    %225 = arith.addf %220, %224 : vector<8x128xf32>
    %c8_i32_61 = arith.constant 8 : i32
    %226 = tpu.dynamic_rotate %221 by %c8_i32_61 dim 1 : vector<8x256xf32>, i32 -> vector<8x256xf32>
    %227 = vector.extract_strided_slice %182 {offsets = [72, 0], sizes = [8, 128], strides = [1, 1]} : vector<128x128xf32> to vector<8x128xf32>
    %228 = vector.extract_strided_slice %226 {offsets = [0, 0], sizes = [8, 128], strides = [1, 1]} : vector<8x256xf32> to vector<8x128xf32>
    %229 = arith.mulf %227, %228 : vector<8x128xf32>
    %230 = arith.addf %225, %229 : vector<8x128xf32>
    %c8_i32_62 = arith.constant 8 : i32
    %231 = tpu.dynamic_rotate %226 by %c8_i32_62 dim 1 : vector<8x256xf32>, i32 -> vector<8x256xf32>
    %232 = vector.extract_strided_slice %182 {offsets = [80, 0], sizes = [8, 128], strides = [1, 1]} : vector<128x128xf32> to vector<8x128xf32>
    %233 = vector.extract_strided_slice %231 {offsets = [0, 0], sizes = [8, 128], strides = [1, 1]} : vector<8x256xf32> to vector<8x128xf32>
    %234 = arith.mulf %232, %233 : vector<8x128xf32>
    %235 = arith.addf %230, %234 : vector<8x128xf32>
    %c8_i32_63 = arith.constant 8 : i32
    %236 = tpu.dynamic_rotate %231 by %c8_i32_63 dim 1 : vector<8x256xf32>, i32 -> vector<8x256xf32>
    %237 = vector.extract_strided_slice %182 {offsets = [88, 0], sizes = [8, 128], strides = [1, 1]} : vector<128x128xf32> to vector<8x128xf32>
    %238 = vector.extract_strided_slice %236 {offsets = [0, 0], sizes = [8, 128], strides = [1, 1]} : vector<8x256xf32> to vector<8x128xf32>
    %239 = arith.mulf %237, %238 : vector<8x128xf32>
    %240 = arith.addf %235, %239 : vector<8x128xf32>
    %c8_i32_64 = arith.constant 8 : i32
    %241 = tpu.dynamic_rotate %236 by %c8_i32_64 dim 1 : vector<8x256xf32>, i32 -> vector<8x256xf32>
    %242 = vector.extract_strided_slice %182 {offsets = [96, 0], sizes = [8, 128], strides = [1, 1]} : vector<128x128xf32> to vector<8x128xf32>
    %243 = vector.extract_strided_slice %241 {offsets = [0, 0], sizes = [8, 128], strides = [1, 1]} : vector<8x256xf32> to vector<8x128xf32>
    %244 = arith.mulf %242, %243 : vector<8x128xf32>
    %245 = arith.addf %240, %244 : vector<8x128xf32>
    %c8_i32_65 = arith.constant 8 : i32
    %246 = tpu.dynamic_rotate %241 by %c8_i32_65 dim 1 : vector<8x256xf32>, i32 -> vector<8x256xf32>
    %247 = vector.extract_strided_slice %182 {offsets = [104, 0], sizes = [8, 128], strides = [1, 1]} : vector<128x128xf32> to vector<8x128xf32>
    %248 = vector.extract_strided_slice %246 {offsets = [0, 0], sizes = [8, 128], strides = [1, 1]} : vector<8x256xf32> to vector<8x128xf32>
    %249 = arith.mulf %247, %248 : vector<8x128xf32>
    %250 = arith.addf %245, %249 : vector<8x128xf32>
    %c8_i32_66 = arith.constant 8 : i32
    %251 = tpu.dynamic_rotate %246 by %c8_i32_66 dim 1 : vector<8x256xf32>, i32 -> vector<8x256xf32>
    %252 = vector.extract_strided_slice %182 {offsets = [112, 0], sizes = [8, 128], strides = [1, 1]} : vector<128x128xf32> to vector<8x128xf32>
    %253 = vector.extract_strided_slice %251 {offsets = [0, 0], sizes = [8, 128], strides = [1, 1]} : vector<8x256xf32> to vector<8x128xf32>
    %254 = arith.mulf %252, %253 : vector<8x128xf32>
    %255 = arith.addf %250, %254 : vector<8x128xf32>
    %c8_i32_67 = arith.constant 8 : i32
    %256 = tpu.dynamic_rotate %251 by %c8_i32_67 dim 1 : vector<8x256xf32>, i32 -> vector<8x256xf32>
    %257 = vector.extract_strided_slice %182 {offsets = [120, 0], sizes = [8, 128], strides = [1, 1]} : vector<128x128xf32> to vector<8x128xf32>
    %258 = vector.extract_strided_slice %256 {offsets = [0, 0], sizes = [8, 128], strides = [1, 1]} : vector<8x256xf32> to vector<8x128xf32>
    %259 = arith.mulf %257, %258 : vector<8x128xf32>
    %260 = arith.addf %255, %259 : vector<8x128xf32>
    %cst_68 = arith.constant dense<0.000000e+00> : vector<128xf32>
    %261 = vector.multi_reduction <add>, %260, %cst_68 [0] : vector<8x128xf32> to vector<128xf32>
    %262 = vector.shape_cast %261 : vector<128xf32> to vector<1x128xf32>
    %cst_69 = arith.constant 1.000000e+00 : f32
    %263 = vector.broadcast %cst_69 : f32 to vector<1x1xf32>
    %264 = arith.divf %263, %174 : vector<1x1xf32>
    %265 = vector.broadcast %264 : vector<1x1xf32> to vector<1x128xf32>
    %266 = arith.mulf %262, %265 : vector<1x128xf32>
    %c0_70 = arith.constant 0 : index
    %c0_71 = arith.constant 0 : index
    %c0_72 = arith.constant 0 : index
    %267 = vector.load %arg5[%c0_70, %c0_71, %c0_72] : memref<1x1x128xf32, #tpu.memory_space<vmem>>, vector<1x1x128xf32>
    %268 = vector.shape_cast %267 : vector<1x1x128xf32> to vector<1x128xf32>
    %cst_73 = arith.constant 0.00999999977 : f32
    %269 = vector.broadcast %cst_73 : f32 to vector<1x128xf32>
    %270 = arith.mulf %269, %268 : vector<1x128xf32>
    %271 = arith.addf %266, %270 : vector<1x128xf32>
    %272 = vector.shape_cast %271 : vector<1x128xf32> to vector<1x1x128xf32>
    %cst_74 = arith.constant dense<0x7F800000> : vector<1xf32>
    %273 = vector.multi_reduction <minimumf>, %272, %cst_74 [1, 2] : vector<1x1x128xf32> to vector<1xf32>
    %274 = vector.shape_cast %273 : vector<1xf32> to vector<1x1x1xf32>
    %275 = vector.extract %274[0, 0, 0] : f32 from vector<1x1x1xf32>
    %276 = vector.shape_cast %271 : vector<1x128xf32> to vector<1x1x128xf32>
    %cst_75 = arith.constant dense<0xFF800000> : vector<1xf32>
    %277 = vector.multi_reduction <maximumf>, %276, %cst_75 [1, 2] : vector<1x1x128xf32> to vector<1xf32>
    %278 = vector.shape_cast %277 : vector<1xf32> to vector<1x1x1xf32>
    %279 = vector.extract %278[0, 0, 0] : f32 from vector<1x1x1xf32>
    %280 = vector.broadcast %275 : f32 to vector<1x128xf32>
    %281 = arith.subf %271, %280 : vector<1x128xf32>
    %282 = arith.subf %279, %275 : f32
    %cst_76 = arith.constant 1.000000e+00 : f32
    %283 = arith.divf %cst_76, %282 : f32
    %284 = vector.broadcast %283 : f32 to vector<1x128xf32>
    %285 = arith.mulf %281, %284 : vector<1x128xf32>
    %c0_77 = arith.constant 0 : index
    %c0_78 = arith.constant 0 : index
    %c0_79 = arith.constant 0 : index
    %286 = vector.load %arg6[%c0_77, %c0_78, %c0_79] : memref<1x1x128xf32, #tpu.memory_space<vmem>>, vector<1x1x128xf32>
    %287 = vector.shape_cast %286 : vector<1x1x128xf32> to vector<1x128xf32>
    %288 = vector.shape_cast %285 : vector<1x128xf32> to vector<1x1x128xf32>
    tpu.vector_store %arg6[%c0_77, %c0_78, %c0_79], %288 {strides = array<i32>} : memref<1x1x128xf32, #tpu.memory_space<vmem>>, vector<1x1x128xf32>,
    return
  }
  func.func @transform_0(%arg0: i32) -> (i32, i32, i32) {
    %c0_i32 = arith.constant 0 : i32
    %c0_i32_0 = arith.constant 0 : i32
    %c0_i32_1 = arith.constant 0 : i32
    return %arg0, %c0_i32, %c0_i32_0 : i32, i32, i32
  }
  func.func @transform_1(%arg0: i32) -> i32 {
    %c0_i32 = arith.constant 0 : i32
    %c0_i32_0 = arith.constant 0 : i32
    return %c0_i32 : i32
  }
  func.func @transform_2(%arg0: i32) -> i32 {
    %c0_i32 = arith.constant 0 : i32
    %c0_i32_0 = arith.constant 0 : i32
    return %c0_i32 : i32
  }
  func.func @transform_3(%arg0: i32) -> (i32, i32) {
    %c0_i32 = arith.constant 0 : i32
    %c0_i32_0 = arith.constant 0 : i32
    %c0_i32_1 = arith.constant 0 : i32
    return %c0_i32, %c0_i32_0 : i32, i32
  }
  func.func @transform_4(%arg0: i32) -> (i32, i32, i32) {
    %c0_i32 = arith.constant 0 : i32
    %c0_i32_0 = arith.constant 0 : i32
    %c0_i32_1 = arith.constant 0 : i32
    return %arg0, %c0_i32, %c0_i32_0 : i32, i32, i32
  }
  func.func @transform_5(%arg0: i32) -> (i32, i32, i32) {
    %c0_i32 = arith.constant 0 : i32
    %c0_i32_0 = arith.constant 0 : i32
    %c0_i32_1 = arith.constant 0 : i32
    return %arg0, %c0_i32, %c0_i32_0 : i32, i32, i32
  }
}

</mosaic_0001>

<bundles_post_ra>
// kernel: tpu_custom_call.1
= control target key start
LH: loop header
LB: loop body
LE: loop exit
PB: predicated region body
PF: predicated region fallthrough
CT: control target
= control target key end

     0   :  { %s1774_s0 = inlined_call_operand.vmem [shape: f32[2,128,1], index: 0, kind: input, shape index: {}]   ;;  %s1775_s1 = inlined_call_operand.vmem [shape: f32[8], index: 1, kind: input, shape index: {}]   ;;  %s1776_s2 = inlined_call_operand.vmem [shape: f32[8], index: 2, kind: input, shape index: {}]   ;;  %s1777_s3 = inlined_call_operand.vmem [shape: f32[1,8], index: 3, kind: input, shape index: {}]   ;;  %s1778_s4 = inlined_call_operand.vmem [shape: f32[2,1,128], index: 4, kind: input, shape index: {}]   ;;  %s1779_s5 = inlined_call_operand.hbm [shape: f32[2,1,128], index: 5, kind: output, shape index: {}]  }
   0x1   :  { %1783 = sst [smem:[#allocation11_spill]] %s1775_s1 }
   0x2   :  { %1784 = sst [smem:[#allocation12_spill]] %s1776_s2 }
   0x3   :  { %10 = vsyncpa [#allocation4], 0 }
   0x4   :  { %11 = vsyncpa [#allocation6], 0 }
   0x5   :  { %12 = vsyncpa [#allocation3], 0 }
   0x6   :  { %14 = vsyncpa [#allocation3 + $0x1], 0  ;;  %s1343_s18 = smov 0   ;;  %s1345_s19 = smov 0  }
   0x7   :  { %s1347_s20 = smov 0   ;;  %s1349_s21 = smov 0  }
   0x8 LB: > { %s1364_s22 = sadd.s32 4294967295, %s1305_s21   ;;  %s949_s23 = sadd.s32 4294967294, %s1305_s21   ;;  %s1305_s21 = sphi %s1349_s21, %s1801_s21   ;;  %s1301_s20 = sphi %s1347_s20, %s1800_s20   ;;  %s1297_s19 = sphi %s1345_s19, %s1799_s19   ;;  %s1293_s18 = sphi %s1343_s18, %s1798_s18  }
   0x9   : > { %s1368_s24 = sadd.s32 1, %s1305_s21   ;;  %s142_s25 = sadd.s32 1, %s1301_s20 }
   0xa   : > { %s139_s26 = ssub.s32 %s1305_s21, %s1368_s24  ;;  %p152_p0 = scmp.ne.s32.totalorder %s1301_s20, %s1297_s19 }
   0xb   : > { %p140_p1 = scmp.eq.s32.totalorder %s139_s26, 0  ;;  %p153_p2 = scmp.eq.s32.totalorder %s1364_s22, 1 }
   0xc   : > { %p158_p3 = scmp.ne.s32.totalorder %s1297_s19, %s1293_s18  ;;  %p159_p4 = scmp.eq.s32.totalorder %s949_s23, 1 }
   0xd   : > { %s1379_s27 = scalar_select %p140_p1, %s1301_s20, %s142_s25  }
   0xe   : > { %p1381_p5 = por %p153_p2, %p152_p0  ;;  %p1385_p6 = por %p159_p4, %p158_p3 }
   0xf   : > { %p950_p7 = scmp.ge.s32.totalorder %s1305_s21, 1  ;;  %p166_p8 = scmp.lt.s32.totalorder %s1305_s21, 3 }
  0x10   : > { %s1785_s28 = scalar_select %p1381_p5, 1, 0 }
  0x11   : > { %s1786_s29 = scalar_select %p1385_p6, 1, 0 }
  0x12   : > { %p1780_p9 = scmp.eq.s32.totalorder %s1364_s22, 0  ;;  %p1392_p10 = pnand %p950_p7, %p166_p8 }
  0x13   : > { %s1788_s1 = sld [smem:[#allocation11_spill]]  ;;  %s1789_s2 = sld [smem:[#allocation12_spill]] }
  0x14   : > { %s1787_s30 = scalar_select %p1392_p10, 1, 0 }
  0x15   : > { %p1045_p11 = pneg %p1392_p10 }
  0x17   : > { %p1406_p12 = pnand %p1780_p9, %p1045_p11 }
  0x19   : > { %s179_s8 = sshll.u32 %s1788_s1, 4  ;;  %s190_s11 = sshll.u32 %s1789_s2, 4  ;;  %s180_s8 = int_to_ptr.vmem [resolvable:$true] %s179_s8  ;;  %s191_s11 = int_to_ptr.vmem [resolvable:$true] %s190_s11 }
  0x1a   : > { %s1205_s13 = scalar_lea.vmem %s180_s8, 16  ;;  %p1207_p0 = pneg %p1406_p12 }
  0x1b   : > { %p1206_p13 = scmp.ne.s32.totalorder %s180_s8, %s1205_s13  ;;  %p1213_p3 = scmp.lt.s32.totalorder %s180_s8, %s180_s8 }
  0x1c   : > { %p1214_p4 = scmp.lt.s32.totalorder %s1205_s13, %s1205_s13 }
  0x1d   : > { %p1208_p1 = pnand %p1207_p0, %p1206_p13 }
  0x1e   : > { %p1215_p7 = por %p1214_p4, %p1213_p3 }
  0x1f   : > { %p1209_p2 = pneg %p1208_p1 }
  0x21   : > { %p1216_p8 = pnand %p1215_p7, %p1209_p2 }
  0x23   : > { %1219 = shalt.err (!%p1216_p8)
}
  0x24   : > { %s1307_s14 = smov [#allocation2]   ;;  %s1220_s15 = scalar_lea.vmem %s191_s11, 16 }
  0x25   : > { %1048 = dma.vmem_to_smem (!%p1406_p12), %s180_s8, 16, %s1307_s14, [#allocation4]  }
  0x26   : > { %p1221_p11 = scmp.ne.s32.totalorder %s191_s11, %s1220_s15  ;;  %p1228_p5 = scmp.lt.s32.totalorder %s191_s11, %s191_s11 }
  0x27   : > { %p1229_p10 = scmp.lt.s32.totalorder %s1220_s15, %s1220_s15 }
  0x28   : > { %p1223_p9 = pnand %p1221_p11, %p1207_p0 }
  0x29   : > { %p1230_p13 = por %p1229_p10, %p1228_p5 }
  0x2a   : > { %p1224_p6 = pneg %p1223_p9 }
  0x2c   : > { %p1231_p1 = pnand %p1230_p13, %p1224_p6 }
  0x2e   : > { %1234 = shalt.err (!%p1231_p1)
}
  0x2f   : > { %s1308_s16 = smov [#allocation5]   ;;  %p1791_p2 = scmp.ne.s32.totalorder %s1787_s30, 0 }
  0x30   : > { %1051 = dma.vmem_to_smem (!%p1406_p12), %s191_s11, 16, %s1308_s16, [#allocation6]  }
  0x31   : > { %220 = sbr.rel (%p1791_p2) target bundleno = 2237 (0x8bd), region = 40  ;;  %p1792_p3 = scmp.eq.s32.totalorder (!%p1791_p2), %s1364_s22, 0 }
  0x38   : > { %1280 = dma.done.wait (%p1792_p3), [#allocation4], 16   ;;  %p1793_p4 = pmov %p1792_p3 }
  0x39   : > { %p1794_p9 = pmov %p1792_p3 }
  0x3a   : > { %1282 = vsyncadd (%p1793_p4), [#allocation4], 4294967280 }
  0x3b   : > { %1284 = dma.done.wait (%p1794_p9), [#allocation6], 16   ;;  %p1795_p5 = pmov %p1792_p3 }
  0x3d   : > { %1286 = vsyncadd (%p1795_p5), [#allocation6], 4294967280 }
  0x3e   : > { %230 = sfence }
  0x3f   : > { %s290_s17 = sld [smem:[#allocation2]]  ;;  %s970_s23 = sld [smem:[#allocation2 + $0x1]]  ;;  %v263_v30 = vlaneseq }
  0x40   : > { %s971_s25 = sld [smem:[#allocation2 + $0x2]]  ;;  %s1426_s26 = sld [smem:[#allocation2 + $0x3]] }
  0x41   : > { %s1428_s30 = sld [smem:[#allocation2 + $0x4]]  ;;  %s1430_s6 = sld [smem:[#allocation2 + $0x5]]  ;;  %v1474_v33 = vand.u32 127, %v263_v30  ;;  %v267_v35 = vshrl.u32 %v263_v30, 7 }
  0x42   : > { %s1432_s7 = sld [smem:[#allocation2 + $0x6]]  ;;  %s1434_s8 = sld [smem:[#allocation2 + $0x7]] }
  0x43   : > { %s1436_s9 = sld [smem:[#allocation5]]  ;;  %s1438_s10 = sld [smem:[#allocation5 + $0x1]]  ;;  %v265_v34 = vadd.s32 128, %v1474_v33  ;;  %v959_v38 = vadd.s32 4294967295, %v1474_v33  ;;  %vm617_vm1 = vcmp.lt.s32.totalorder %v1474_v33, 8 }
  0x45   : > { %p312_p6 = scmp.lt.f32.partialorder %s290_s17, 0.0  ;;  %s313_s11 = ssub.f32 0.0, %s290_s17  ;;  %v960_v36 = vadd.s32 4294967295, %v265_v34  ;;  %vm273_vm0 = vcmp.le.s32.totalorder %v265_v34, 128  ;;  %v270_v40 = vsub.s32 %v959_v38, %v267_v35 }
  0x46   : > { %p338_p10 = scmp.lt.f32.partialorder %s970_s23, 0.0  ;;  %s339_s12 = ssub.f32 0.0, %s970_s23 }
  0x47   : > { %s1803_s11 = smov (!%p312_p6, %s313_s11), %s290_s17  ;;  %p366_p12 = scmp.lt.f32.partialorder %s971_s25, 0.0  ;;  %v271_v37 = vsub.s32 %v960_v36, %v267_v35  ;;  %v278_v42 = vcvt.s32.f32 %v270_v40 }
  0x48   : > { %s1805_s12 = smov (!%p338_p10, %s339_s12), %s970_s23  ;;  %s315_s13 = smul.f32 2.0, %s1803_s11  ;;  %v320_v0 = vstv %s1803_s11 }
  0x49   : > { %s341_s14 = smul.f32 2.0, %s1805_s12  ;;  %v346_v1 = vstv %s1805_s12  ;;  %s367_s15 = ssub.f32 0.0, %s971_s25  ;;  %1135 = vrcp.f32 %v320_v0  ;;  %v962_v39 = vadd.s32 4294967040, %v271_v37  ;;  %v1493_v44 = vmul.f32 %v278_v42, %v278_v42 }
  0x4a   : > { %s316_s16 = smul.f32 %s315_s13, %s1803_s11  ;;  %p394_p0 = scmp.lt.f32.partialorder %s1426_s26, 0.0  ;;  %1137 = vrcp.f32 %v346_v1 }
  0x4b   : > { %s342_s1 = smul.f32 %s341_s14, %s1805_s12  ;;  %s395_s2 = ssub.f32 0.0, %s1426_s26  ;;  %v277_v41 = vsel %vm273_vm0, %v271_v37, %v962_v39 }
  0x4c   : > { %v317_v2 = vstv %s316_s16  ;;  %s1807_s15 = smov (!%p366_p12, %s367_s15), %s971_s25  ;;  %p422_p7 = scmp.lt.f32.partialorder %s1428_s30, 0.0  ;;  %v279_v43 = vcvt.s32.f32 %v277_v41 }
  0x4d   : > { %1139 = vrcp.f32 %v317_v2  ;;  %v343_v3 = vstv %s342_s1  ;;  %s1809_s2 = smov (!%p394_p0, %s395_s2), %s1426_s26  ;;  %s369_s17 = smul.f32 2.0, %s1807_s15  ;;  %v374_v4 = vstv %s1807_s15 }
  0x4e   : > { %1141 = vrcp.f32 %v343_v3  ;;  %s397_s23 = smul.f32 2.0, %s1809_s2  ;;  %v402_v5 = vstv %s1809_s2  ;;  %s423_s11 = ssub.f32 0.0, %s1428_s30  ;;  %v1495_v45 = vmul.f32 %v279_v43, %v279_v43 }
  0x4f   : > { %s370_s12 = smul.f32 %s369_s17, %s1807_s15  ;;  %p450_p8 = scmp.lt.f32.partialorder %s1430_s6, 0.0  ;;  %1143 = vrcp.f32 %v374_v4 }
  0x50   : > { %s398_s13 = smul.f32 %s397_s23, %s1809_s2  ;;  %s451_s14 = ssub.f32 0.0, %s1430_s6  ;;  %1145 = vrcp.f32 %v402_v5 }
  0x51   : > { %v371_v6 = vstv %s370_s12  ;;  %s1811_s11 = smov (!%p422_p7, %s423_s11), %s1428_s30  ;;  %p478_p11 = scmp.lt.f32.partialorder %s1432_s7, 0.0 }
  0x52   : > { %1147 = vrcp.f32 %v371_v6  ;;  %v399_v7 = vstv %s398_s13  ;;  %s1813_s14 = smov (!%p450_p8, %s451_s14), %s1430_s6  ;;  %s425_s1 = smul.f32 2.0, %s1811_s11  ;;  %v430_v8 = vstv %s1811_s11 }
  0x53   : > { %1149 = vrcp.f32 %v399_v7  ;;  %v1136_v9 = vpop.eup %1135  ;;  %s453_s25 = smul.f32 2.0, %s1813_s14  ;;  %v458_v10 = vstv %s1813_s14  ;;  %s479_s26 = ssub.f32 0.0, %s1432_s7 }
  0x54   : > { %v1138_v11 = vpop.eup %1137  ;;  %s426_s2 = smul.f32 %s425_s1, %s1811_s11  ;;  %p506_p13 = scmp.lt.f32.partialorder %s1434_s8, 0.0  ;;  %1151 = vrcp.f32 %v430_v8 }
  0x55   : > { %s454_s30 = smul.f32 %s453_s25, %s1813_s14  ;;  %s507_s15 = ssub.f32 0.0, %s1434_s8  ;;  %1153 = vrcp.f32 %v458_v10 }
  0x56   : > { %v427_v14 = vstv %s426_s2  ;;  %s1815_s26 = smov (!%p478_p11, %s479_s26), %s1432_s7  ;;  %s1457_s16 = sld [smem:[#allocation5 + $0x2]] }
  0x57   : > { %v1140_v12 = vpop.eup %1139  ;;  %1155 = vrcp.f32 %v427_v14  ;;  %v455_v15 = vstv %s454_s30  ;;  %s1817_s15 = smov (!%p506_p13, %s507_s15), %s1434_s8  ;;  %s481_s6 = smul.f32 2.0, %s1815_s26  ;;  %v486_v16 = vstv %s1815_s26 }
  0x58   : > { %v1142_v13 = vpop.eup %1141  ;;  %997 = vpush %v1140_v12  ;;  %1157 = vrcp.f32 %v455_v15  ;;  %s509_s17 = smul.f32 2.0, %s1817_s15  ;;  %v514_v18 = vstv %s1817_s15  ;;  %s1459_s8 = sld [smem:[#allocation5 + $0x3]] }
  0x59   : > { %999 = vpush %v1136_v9  ;;  %v1144_v17 = vpop.eup %1143  ;;  %s482_s7 = smul.f32 %s481_s6, %s1815_s26  ;;  %1159 = vrcp.f32 %v486_v16  ;;  %p298_p1 = scmp.gt.f32.partialorder %s1438_s10, %s1436_s9 }
  0x5a   : > { %1001 = vpush %v1142_v13  ;;  %v1146_v19 = vpop.eup %1145  ;;  %s510_s23 = smul.f32 %s509_s17, %s1817_s15  ;;  %1161 = vrcp.f32 %v514_v18  ;;  %s1465_s12 = sld [smem:[#allocation5 + $0x4]] }
  0x5b   : > { %1003 = vpush %v1138_v11  ;;  %v483_v22 = vstv %s482_s7  ;;  %s299_s11 = scalar_select %p298_p1, %s1438_s10, %s1436_s9 }
  0x5c   : > { %v1148_v20 = vpop.eup %1147  ;;  %1163 = vrcp.f32 %v483_v22  ;;  %v511_v23 = vstv %s510_s23  ;;  %s1469_s14 = sld [smem:[#allocation5 + $0x5]]  ;;  %s1477_s26 = sld [smem:[#allocation5 + $0x6]] }
  0x5d   : > { %v1150_v21 = vpop.eup %1149  ;;  %1005 = vpush %v1148_v20  ;;  %1165 = vrcp.f32 %v511_v23  ;;  %p300_p2 = scmp.gt.f32.partialorder %s1457_s16, %s299_s11  ;;  %s1482_s30 = sld [smem:[#allocation5 + $0x7]] }
  0x5e   : > { %1007 = vpush %v1144_v17  ;;  %v1152_v24 = vpop.eup %1151  ;;  %p255_p10 = scmp.lt.s32.totalorder %s1364_s22, 1  ;;  %p1796_p0 = scmp.ne.s32.totalorder %s1785_s28, 0 }
  0x5f   : > { %1009 = vpush %v1150_v21  ;;  %v1154_v25 = vpop.eup %1153  ;;  %s301_s13 = scalar_select %p300_p2, %s1457_s16, %s299_s11 }
  0x60   : > { %1011 = vpush %v1146_v19 }
  0x61   : > { %v1156_v26 = vpop.eup %1155  ;;  %p302_p3 = scmp.gt.f32.partialorder %s1459_s8, %s301_s13 }
  0x62   : > { %v1158_v27 = vpop.eup %1157  ;;  %1013 = vpush %v1156_v26 }
  0x63   : > { %1015 = vpush %v1152_v24  ;;  %v1160_v28 = vpop.eup %1159  ;;  %s303_s1 = scalar_select %p302_p3, %s1459_s8, %s301_s13 }
  0x64   : > { %1017 = vpush %v1158_v27  ;;  %v1162_v29 = vpop.eup %1161 }
  0x65   : > { %1019 = vpush %v1154_v25  ;;  %p304_p4 = scmp.gt.f32.partialorder %s1465_s12, %s303_s1 }
  0x66   : > { %v1164_v31 = vpop.eup %1163 }
  0x67   : > { %v1166_v32 = vpop.eup %1165  ;;  %1021 = vpush %v1164_v31  ;;  %s305_s25 = scalar_select %p304_p4, %s1465_s12, %s303_s1 }
  0x68   : > { %1023 = vpush %v1160_v28 }
  0x69   : > { %1025 = vpush %v1166_v32  ;;  %p306_p9 = scmp.gt.f32.partialorder %s1469_s14, %s305_s25 }
  0x6a   : > { %1027 = vpush %v1162_v29 }
  0x6b   : > { %s307_s2 = scalar_select %p306_p9, %s1469_s14, %s305_s25 }
  0x6d   : > { %p308_p5 = scmp.gt.f32.partialorder %s1477_s26, %s307_s2 }
  0x6f   : > { %s309_s15 = scalar_select %p308_p5, %s1477_s26, %s307_s2 }
  0x71   : > { %p310_p6 = scmp.gt.f32.partialorder %s1482_s30, %s309_s15 }
  0x73   : > { %s1489_s6 = scalar_select %p310_p6, %s1482_s30, %s309_s15 }
  0x75   : > { %s324_s17 = ssub.f32 %s1436_s9, %s1489_s6 }
  0x76   : > { %s350_s7 = ssub.f32 %s1438_s10, %s1489_s6 }
  0x77   : > { %v328_v47 = vstv %s324_s17  ;;  %s378_s9 = ssub.f32 %s1457_s16, %s1489_s6 }
  0x78   : > { %v354_v51 = vstv %s350_s7  ;;  %s406_s25 = ssub.f32 %s1459_s8, %s1489_s6 }
  0x79   : > { %v382_v61 = vstv %s378_s9  ;;  %s434_s8 = ssub.f32 %s1465_s12, %s1489_s6 }
  0x7a   : > { %v410_v5 = vstv %s406_s25  ;;  %s462_s17 = ssub.f32 %s1469_s14, %s1489_s6 }
  0x7b   : > { %s490_s7 = ssub.f32 %s1477_s26, %s1489_s6  ;;  %v438_v13 = vstv %s434_s8 }
  0x7c   : > { %v466_v16 = vstv %s462_s17 }
  0x7d   : > { %v494_v23 = vstv %s490_s7 }
  0x89   : > { %s998_s23 = spop %997 }
  0x8a   : > { %v325_v46 = vstv %s998_s23  ;;  %s1499_s11 = spop %999 }
  0x8b   : > { %v326_v48 = vmul.f32 %v325_v46, %v1493_v44  ;;  %v327_v49 = vmul.f32 %v325_v46, %v1495_v45  ;;  %s1002_s13 = spop %1001  ;;  %s323_s9 = smul.f32 0.3989423, %s1499_s11 }
  0x8c   : > { %v351_v50 = vstv %s1002_s13  ;;  %s1506_s10 = spop %1003  ;;  %s518_s13 = ssub.f32 %s1482_s30, %s1489_s6 }
  0x8d   : > { %v329_v52 = vsub.f32 %v328_v47, %v326_v48  ;;  %v330_v53 = vsub.f32 %v328_v47, %v327_v49  ;;  %v352_v54 = vmul.f32 %v351_v50, %v1493_v44  ;;  %v353_v55 = vmul.f32 %v351_v50, %v1495_v45  ;;  %s349_s26 = smul.f32 0.3989423, %s1506_s10 }
  0x8e   : > { %s1006_s1 = spop %1005  ;;  %v335_v24 = vstv %s323_s9  ;;  %v522_v26 = vstv %s518_s13 }
  0x8f   : > { %v331_v56 = vmul.f32 1.442695, %v329_v52  ;;  %v333_v57 = vmul.f32 1.442695, %v330_v53  ;;  %v355_v58 = vsub.f32 %v354_v51, %v352_v54  ;;  %v356_v59 = vsub.f32 %v354_v51, %v353_v55  ;;  %s1511_s16 = spop %1007 }
  0x90   : > { %v379_v60 = vstv %s1006_s1  ;;  %s1010_s2 = spop %1009  ;;  %s377_s11 = smul.f32 0.3989423, %s1511_s16  ;;  %v361_v34 = vstv %s349_s26 }
  0x91   : > { %1167 = vpow2.f32 %v331_v56  ;;  %v357_v62 = vmul.f32 1.442695, %v355_v58  ;;  %v380_v63 = vmul.f32 %v379_v60, %v1493_v44  ;;  %v381_v0 = vmul.f32 %v379_v60, %v1495_v45  ;;  %s1517_s15 = spop %1011 }
  0x92   : > { %1169 = vpow2.f32 %v333_v57  ;;  %v359_v1 = vmul.f32 1.442695, %v356_v59  ;;  %v407_v2 = vstv %s1010_s2  ;;  %v389_v48 = vstv %s377_s11  ;;  %s405_s16 = smul.f32 0.3989423, %s1517_s15 }
  0x93   : > { %1171 = vpow2.f32 %v357_v62  ;;  %v383_v3 = vsub.f32 %v382_v61, %v380_v63  ;;  %v384_v4 = vsub.f32 %v382_v61, %v381_v0  ;;  %v408_v6 = vmul.f32 %v407_v2, %v1493_v44  ;;  %s1014_s23 = spop %1013 }
  0x94   : > { %1173 = vpow2.f32 %v359_v1  ;;  %v409_v7 = vmul.f32 %v407_v2, %v1495_v45  ;;  %v435_v12 = vstv %s1014_s23  ;;  %s1528_s12 = spop %1015  ;;  %v417_v2 = vstv %s405_s16  ;;  %s1309_s23 = smov 8  }
  0x95   : > { %v385_v8 = vmul.f32 1.442695, %v383_v3  ;;  %v387_v9 = vmul.f32 1.442695, %v384_v4  ;;  %v411_v10 = vsub.f32 %v410_v5, %v408_v6  ;;  %v436_v14 = vmul.f32 %v435_v12, %v1493_v44  ;;  %s1018_s14 = spop %1017  ;;  %s433_s2 = smul.f32 0.3989423, %s1528_s12 }
  0x96   : > { %v412_v11 = vsub.f32 %v410_v5, %v409_v7  ;;  %v437_v15 = vmul.f32 %v435_v12, %v1495_v45  ;;  %v463_v19 = vstv %s1018_s14  ;;  %s1534_s30 = spop %1019 }
  0x97   : > { %1175 = vpow2.f32 %v385_v8  ;;  %v413_v17 = vmul.f32 1.442695, %v411_v10  ;;  %v439_v20 = vsub.f32 %v438_v13, %v436_v14  ;;  %v464_v22 = vmul.f32 %v463_v19, %v1493_v44  ;;  %s461_s8 = smul.f32 0.3989423, %s1534_s30 }
  0x98   : > { %1177 = vpow2.f32 %v387_v9  ;;  %v415_v18 = vmul.f32 1.442695, %v412_v11  ;;  %v440_v21 = vsub.f32 %v438_v13, %v437_v15  ;;  %v465_v25 = vmul.f32 %v463_v19, %v1495_v45  ;;  %s1022_s10 = spop %1021 }
  0x99   : > { %1179 = vpow2.f32 %v413_v17  ;;  %v441_v28 = vmul.f32 1.442695, %v439_v20  ;;  %v467_v30 = vsub.f32 %v466_v16, %v464_v22  ;;  %v491_v36 = vstv %s1022_s10  ;;  %s1538_s1 = spop %1023 }
  0x9a   : > { %1181 = vpow2.f32 %v415_v18  ;;  %v443_v29 = vmul.f32 1.442695, %v440_v21  ;;  %v468_v35 = vsub.f32 %v466_v16, %v465_v25  ;;  %v492_v40 = vmul.f32 %v491_v36, %v1493_v44  ;;  %s1026_s25 = spop %1025  ;;  %s489_s17 = smul.f32 0.3989423, %s1538_s1 }
  0x9b   : > { %v1168_v27 = vpop.eup %1167  ;;  %1183 = vpow2.f32 %v441_v28  ;;  %v469_v39 = vmul.f32 1.442695, %v467_v30  ;;  %v493_v46 = vmul.f32 %v491_v36, %v1495_v45  ;;  %v519_v52 = vstv %s1026_s25  ;;  %s1028_s15 = spop %1027 }
  0x9c   : > { %v1170_v31 = vpop.eup %1169  ;;  %v336_v32 = vmul.f32 %v1168_v27, %v335_v24  ;;  %1185 = vpow2.f32 %v443_v29  ;;  %v471_v43 = vmul.f32 1.442695, %v468_v35  ;;  %v495_v49 = vsub.f32 %v494_v23, %v492_v40  ;;  %s517_s7 = smul.f32 0.3989423, %s1028_s15  ;;  %s993_s15 = sshll.u32 %s1364_s22, 4 }
  0x9d   : > { %v1172_v37 = vpop.eup %1171  ;;  %v337_v38 = vmul.f32 %v1170_v31, %v335_v24  ;;  %1187 = vpow2.f32 %v469_v39  ;;  %v496_v51 = vsub.f32 %v494_v23, %v493_v46  ;;  %v520_v56 = vmul.f32 %v519_v52, %v1493_v44  ;;  %s1664_s13 = scalar_select %p255_p10, %s1364_s22, 1 }
  0x9e   : > { %v1174_v41 = vpop.eup %1173  ;;  %v362_v42 = vmul.f32 %v1172_v37, %v361_v34  ;;  %1189 = vpow2.f32 %v471_v43  ;;  %v497_v55 = vmul.f32 1.442695, %v495_v49  ;;  %v521_v57 = vmul.f32 %v519_v52, %v1495_v45  ;;  %s1732_s12 = scalar_lea.hbm %s1779_s5, %s993_s15  ;;  %s1312_s22 = smov [#allocation7]  }
  0x9f   : > { %v363_v47 = vmul.f32 %v1174_v41, %v361_v34  ;;  %v499_v60 = vmul.f32 1.442695, %v496_v51  ;;  %v523_v62 = vsub.f32 %v522_v26, %v520_v56  ;;  %v445_v9 = vstv %s433_s2  ;;  %s996_s9 = sshll.u32 %s1664_s13, 7  ;;  %s262_s1 = scalar_lea.vmem %s1778_s4, %s1664_s13 }
  0xa0   : > { %v364_v50 = vadd.f32 %v362_v42, %v336_v32  ;;  %1191 = vpow2.f32 %v497_v55  ;;  %v524_v63 = vsub.f32 %v522_v26, %v521_v57  ;;  %v473_v14 = vstv %s461_s8  ;;  %s1670_s26 = scalar_lea.vmem %s1774_s0, %s996_s9  ;;  %s253_s8 = sand.u32 1, %s1297_s19  }
  0xa1   : > { %v1176_v53 = vpop.eup %1175  ;;  %v365_v54 = vadd.f32 %v363_v47, %v337_v38  ;;  %1193 = vpow2.f32 %v499_v60  ;;  %v525_v44 = vmul.f32 1.442695, %v523_v62  ;;  %v501_v22 = vstv %s489_s17  ;;  %s254_s17 = scalar_lea.vmem [#allocation7], %s253_s8  ;;  %s851_s14 = scalar_lea.sflag [#allocation3], %s253_s8 }
  0xa2   : > { %v1178_v58 = vpop.eup %1177  ;;  %v390_v59 = vmul.f32 %v1176_v53, %v389_v48  ;;  %v527_v45 = vmul.f32 1.442695, %v524_v63  ;;  %v529_v26 = vstv %s517_s7  ;;  %s863_s7 = sshll.u32 %s254_s17, 4  ;;  %s1239_s30 = sshll.u32 %s1312_s22, 4  ;;  %s1734_s7 = int_to_ptr.vmem [resolvable:$true] %s863_s7  ;;  %s1240_s30 = int_to_ptr.vmem [resolvable:$false] %s1239_s30 }
  0xa3   : > { %v391_v61 = vmul.f32 %v1178_v58, %v389_v48  ;;  %v1180_v0 = vpop.eup %1179  ;;  %1195 = vpow2.f32 %v525_v44  ;;  %s1241_s11 = scalar_lea.vmem %s1240_s30, 32  ;;  %p1242_p11 = scmp.lt.s32.totalorder %s1734_s7, %s1240_s30 }
  0xa4   : > { %v392_v1 = vadd.f32 %v390_v59, %v364_v50  ;;  %v1182_v3 = vpop.eup %1181  ;;  %v418_v5 = vmul.f32 %v1180_v0, %v417_v2  ;;  %1197 = vpow2.f32 %v527_v45 }
  0xa5   : > { %v393_v4 = vadd.f32 %v391_v61, %v365_v54  ;;  %v419_v6 = vmul.f32 %v1182_v3, %v417_v2  ;;  %v1184_v7 = vpop.eup %1183 }
  0xa6   : > { %v420_v8 = vadd.f32 %v418_v5, %v392_v1  ;;  %v1186_v10 = vpop.eup %1185  ;;  %v446_v12 = vmul.f32 %v1184_v7, %v445_v9 }
  0xa7   : > { %v421_v11 = vadd.f32 %v419_v6, %v393_v4  ;;  %v1188_v13 = vpop.eup %1187  ;;  %v447_v16 = vmul.f32 %v1186_v10, %v445_v9 }
  0xa8   : > { %v1190_v15 = vpop.eup %1189  ;;  %v448_v17 = vadd.f32 %v446_v12, %v420_v8  ;;  %v474_v18 = vmul.f32 %v1188_v13, %v473_v14 }
  0xa9   : > { %v449_v19 = vadd.f32 %v447_v16, %v421_v11  ;;  %v475_v24 = vmul.f32 %v1190_v15, %v473_v14 }
  0xaa   : > { %v476_v20 = vadd.f32 %v474_v18, %v448_v17  ;;  %v1192_v21 = vpop.eup %1191  ;;  %v1310_v18 = vmov 0  }
  0xab   : > { %v1194_v23 = vpop.eup %1193  ;;  %v502_v25 = vmul.f32 %v1192_v21, %v501_v22  ;;  %v477_v27 = vadd.f32 %v475_v24, %v449_v19  ;;  %1104 = vset.pattern.permute.xlu1 %v1310_v18  ;;  %1098 = vset.pattern.permute.xlu0 %v1310_v18  ;;  %v546_v24 = vld [vmem:[%s1670_s26 + $0x18] sm:$0xff] }
  0xac   : > { %v503_v31 = vmul.f32 %v1194_v23, %v501_v22  ;;  %v545_v23 = vld [vmem:[%s1670_s26 + $0x10] sm:$0xff]  ;;  %vm562_vm3 = vcmp.gt.f32.partialorder %v546_v24, 0.5 }
  0xad   : > { %v504_v28 = vadd.f32 %v502_v25, %v476_v20  ;;  %v1196_v29 = vpop.eup %1195  ;;  %v543_v25 = vld [vmem:[%s1670_s26] sm:$0xff]  ;;  %vm561_vm2 = vcmp.gt.f32.partialorder %v545_v23, 0.5 }
  0xae   : > { %v1198_v30 = vpop.eup %1197  ;;  %v530_v32 = vmul.f32 %v1196_v29, %v529_v26  ;;  %v505_v34 = vadd.f32 %v503_v31, %v477_v27  ;;  %vm559_vm4 = vcmp.gt.f32.partialorder %v543_v25, 0.5  ;;  %v547_v27 = vld [vmem:[%s1670_s26 + $0x20] sm:$0xff]  ;;  %v549_v29 = vld [vmem:[%s1670_s26 + $0x30] sm:$0xff]  ;;  %v1311_v31 = vmov 0.0  }
  0xaf   : > { %v531_v35 = vmul.f32 %v1198_v30, %v529_v26  ;;  %v544_v26 = vld [vmem:[%s1670_s26 + $0x8] sm:$0xff]  ;;  %v550_v30 = vld [vmem:[%s1670_s26 + $0x38] sm:$0xff]  ;;  %vm563_vm6 = vcmp.gt.f32.partialorder %v547_v27, 0.5  ;;  %vm565_vm8 = vcmp.gt.f32.partialorder %v549_v29, 0.5 }
  0xb0   : > { %v1548_v36 = vadd.f32 %v530_v32, %v504_v28  ;;  %vm560_vm5 = vcmp.gt.f32.partialorder %v544_v26, 0.5  ;;  %v548_v28 = vld [vmem:[%s1670_s26 + $0x28] sm:$0xff]  ;;  %v979_v32 = vsel %vm561_vm2, 1.0, %v1311_v31  ;;  %vm566_vm9 = vcmp.gt.f32.partialorder %v550_v30, 0.5 }
  0xb1   : > { %v533_v37 = vadd.f32 %v531_v35, %v505_v34  ;;  %v980_v34 = vsel %vm562_vm3, 1.0, %v1311_v31  ;;  %v977_v35 = vsel %vm559_vm4, 1.0, %v1311_v31  ;;  %vm564_vm7 = vcmp.gt.f32.partialorder %v548_v28, 0.5 }
  0xb2   : > { %613 = vrot.lane.b32.xlu0 %v1548_v36, %s1309_s23  ;;  %vm539_vm3 = vcmask 57344  }
  0xb6   : > { %615 = vrot.lane.b32.xlu0 %v533_v37, %s1309_s23  ;;  %v978_v37 = vsel %vm560_vm5, 1.0, %v1311_v31 }
 0x124   : > { %v614_v38 = vpop.permute.xlu0 %613 }
 0x128   : > { %v616_v39 = vpop.permute.xlu0 %615 }
 0x129   : > { %v1556_v40 = vsel %vm617_vm1, %v616_v39, %v614_v38  ;;  %v618_v41 = vsel %vm617_vm1, %v614_v38, %v616_v39 }
 0x12a   : > { %627 = vrot.lane.b32.xlu1 %v1556_v40, %s1309_s23 }
 0x12e   : > { %629 = vrot.lane.b32.xlu1 %v618_v41, %s1309_s23  ;;  %v551_v41 = vld [vmem:[%s1670_s26 + $0x40] sm:$0xff] }
 0x12f   : > { %vm567_vm10 = vcmp.gt.f32.partialorder %v551_v41, 0.5 }
 0x19c   : > { %v628_v42 = vpop.permute.xlu1 %627 }
 0x1a0   : > { %v630_v43 = vpop.permute.xlu1 %629 }
 0x1a1   : > { %v1565_v46 = vsel %vm617_vm1, %v630_v43, %v628_v42  ;;  %v631_v47 = vsel %vm617_vm1, %v628_v42, %v630_v43 }
 0x1a2   : > { %640 = vrot.lane.b32.xlu0 %v1565_v46, %s1309_s23  ;;  %642 = vrot.lane.b32.xlu1 %v631_v47, %s1309_s23  ;;  %v552_v47 = vld [vmem:[%s1670_s26 + $0x48] sm:$0xff] }
 0x1a3   : > { %vm568_vm11 = vcmp.gt.f32.partialorder %v552_v47, 0.5 }
 0x214   : > { %v641_v48 = vpop.permute.xlu0 %640  ;;  %v643_v49 = vpop.permute.xlu1 %642 }
 0x215   : > { %v1574_v50 = vsel %vm617_vm1, %v643_v49, %v641_v48  ;;  %v644_v51 = vsel %vm617_vm1, %v641_v48, %v643_v49  ;;  %v553_v48 = vld [vmem:[%s1670_s26 + $0x50] sm:$0xff]  ;;  %v554_v49 = vld [vmem:[%s1670_s26 + $0x58] sm:$0xff] }
 0x216   : > { %653 = vrot.lane.b32.xlu0 %v1574_v50, %s1309_s23  ;;  %655 = vrot.lane.b32.xlu1 %v644_v51, %s1309_s23  ;;  %v1105_v51 = vpack.i.bf16 %v980_v34, %v979_v32  ;;  %vm569_vm12 = vcmp.gt.f32.partialorder %v553_v48, 0.5  ;;  %vm570_vm13 = vcmp.gt.f32.partialorder %v554_v49, 0.5 }
 0x288   : > { %v654_v52 = vpop.permute.xlu0 %653  ;;  %v656_v53 = vpop.permute.xlu1 %655 }
 0x289   : > { %v1583_v54 = vsel %vm617_vm1, %v656_v53, %v654_v52  ;;  %v657_v55 = vsel %vm617_vm1, %v654_v52, %v656_v53  ;;  %v1099_v52 = vpack.i.bf16 %v978_v37, %v977_v35  ;;  %v981_v53 = vsel %vm563_vm6, 1.0, %v1311_v31 }
 0x28a   : > { %666 = vrot.lane.b32.xlu0 %v1583_v54, %s1309_s23  ;;  %668 = vrot.lane.b32.xlu1 %v657_v55, %s1309_s23  ;;  %v982_v55 = vsel %vm564_vm7, 1.0, %v1311_v31 }
 0x2fc   : > { %v667_v56 = vpop.permute.xlu0 %666  ;;  %v669_v57 = vpop.permute.xlu1 %668 }
 0x2fd   : > { %v1592_v58 = vsel %vm617_vm1, %v669_v57, %v667_v56  ;;  %v670_v59 = vsel %vm617_vm1, %v667_v56, %v669_v57  ;;  %v983_v56 = vsel %vm565_vm8, 1.0, %v1311_v31  ;;  %v984_v57 = vsel %vm566_vm9, 1.0, %v1311_v31 }
 0x2fe   : > { %679 = vrot.lane.b32.xlu0 %v1592_v58, %s1309_s23  ;;  %681 = vrot.lane.b32.xlu1 %v670_v59, %s1309_s23  ;;  %v555_v59 = vld [vmem:[%s1670_s26 + $0x60] sm:$0xff] }
 0x2ff   : > { %vm571_vm14 = vcmp.gt.f32.partialorder %v555_v59, 0.5 }
 0x370   : > { %v680_v60 = vpop.permute.xlu0 %679  ;;  %v682_v61 = vpop.permute.xlu1 %681 }
 0x371   : > { %v1601_v62 = vsel %vm617_vm1, %v682_v61, %v680_v60  ;;  %v683_v63 = vsel %vm617_vm1, %v680_v60, %v682_v61  ;;  %v556_v60 = vld [vmem:[%s1670_s26 + $0x68] sm:$0xff]  ;;  %v1110_v61 = vpack.i.bf16 %v982_v55, %v981_v53 }
 0x372   : > { %692 = vrot.lane.b32.xlu0 %v1601_v62, %s1309_s23  ;;  %694 = vrot.lane.b32.xlu1 %v683_v63, %s1309_s23  ;;  %v1115_v63 = vpack.i.bf16 %v984_v57, %v983_v56  ;;  %vm572_vm15 = vcmp.gt.f32.partialorder %v556_v60, 0.5 }
 0x3e4   : > { %v693_v0 = vpop.permute.xlu0 %692  ;;  %v695_v1 = vpop.permute.xlu1 %694 }
 0x3e5   : > { %v1610_v2 = vsel %vm617_vm1, %v695_v1, %v693_v0  ;;  %v696_v3 = vsel %vm617_vm1, %v693_v0, %v695_v1  ;;  %v985_v0 = vsel %vm567_vm10, 1.0, %v1311_v31  ;;  %v986_v1 = vsel %vm568_vm11, 1.0, %v1311_v31 }
 0x3e6   : > { %705 = vrot.lane.b32.xlu0 %v1610_v2, %s1309_s23  ;;  %707 = vrot.lane.b32.xlu1 %v696_v3, %s1309_s23  ;;  %v987_v3 = vsel %vm569_vm12, 1.0, %v1311_v31 }
 0x458   : > { %v706_v4 = vpop.permute.xlu0 %705  ;;  %v708_v5 = vpop.permute.xlu1 %707 }
 0x459   : > { %v1619_v44 = vsel %vm617_vm1, %v708_v5, %v706_v4  ;;  %v709_v45 = vsel %vm617_vm1, %v706_v4, %v708_v5  ;;  %v988_v4 = vsel %vm570_vm13, 1.0, %v1311_v31  ;;  %v1120_v5 = vpack.i.bf16 %v986_v1, %v985_v0 }
 0x45a   : > { %718 = vrot.lane.b32.xlu0 %v1619_v44, %s1309_s23  ;;  %720 = vrot.lane.b32.xlu1 %v709_v45, %s1309_s23  ;;  %v1125_v45 = vpack.i.bf16 %v988_v4, %v987_v3 }
 0x4cc   : > { %v719_v6 = vpop.permute.xlu0 %718  ;;  %v721_v7 = vpop.permute.xlu1 %720 }
 0x4cd   : > { %v1628_v8 = vsel %vm617_vm1, %v721_v7, %v719_v6  ;;  %v722_v9 = vsel %vm617_vm1, %v719_v6, %v721_v7  ;;  %v989_v6 = vsel %vm571_vm14, 1.0, %v1311_v31  ;;  %v990_v7 = vsel %vm572_vm15, 1.0, %v1311_v31 }
 0x4ce   : > { %731 = vrot.lane.b32.xlu0 %v1628_v8, %s1309_s23  ;;  %733 = vrot.lane.b32.xlu1 %v722_v9, %s1309_s23  ;;  %v557_v9 = vld [vmem:[%s1670_s26 + $0x70] sm:$0xff] }
 0x4cf   : > { %vm573_vm0 = vcmp.gt.f32.partialorder %v557_v9, 0.5 }
 0x540   : > { %v732_v10 = vpop.permute.xlu0 %731  ;;  %v734_v11 = vpop.permute.xlu1 %733 }
 0x541   : > { %v1637_v12 = vsel %vm617_vm1, %v734_v11, %v732_v10  ;;  %v735_v13 = vsel %vm617_vm1, %v732_v10, %v734_v11  ;;  %v1130_v10 = vpack.i.bf16 %v990_v7, %v989_v6  ;;  %v558_v11 = vld [vmem:[%s1670_s26 + $0x78] sm:$0xff]  ;;  %s1235_s26 = scalar_lea.vmem %s1734_s7, 16 }
 0x542   : > { %744 = vrot.lane.b32.xlu0 %v1637_v12, %s1309_s23  ;;  %746 = vrot.lane.b32.xlu1 %v735_v13, %s1309_s23  ;;  %v534_v13 = vld [vmem:[%s1777_s3] sm:$0x1]  ;;  %vm574_vm2 = vcmp.gt.f32.partialorder %v558_v11, 0.5  ;;  %p1236_p12 = scmp.ne.s32.totalorder %s1734_s7, %s1235_s26  ;;  %p1243_p13 = scmp.lt.s32.totalorder %s1241_s11, %s1235_s26 }
 0x543   : > { %v992_v18 = vsel %vm574_vm2, 1.0, %v1311_v31 }
 0x544   : > { %p1237_p7 = pnand %p1236_p12, %p1796_p0  ;;  %p1244_p1 = por %p1243_p13, %p1242_p11 }
 0x546   : > { %p1238_p8 = pneg %p1237_p7 }
 0x548   : > { %p1245_p2 = pnand %p1244_p1, %p1238_p8 }
 0x5b4   : > { %v745_v14 = vpop.permute.xlu0 %744  ;;  %v747_v15 = vpop.permute.xlu1 %746 }
 0x5b5   : > { %v1646_v16 = vsel %vm617_vm1, %v747_v15, %v745_v14  ;;  %v748_v17 = vsel %vm617_vm1, %v745_v14, %v747_v15  ;;  %v535_v14 = vstv %s1489_s6  ;;  %v991_v15 = vsel %vm573_vm0, 1.0, %v1311_v31 }
 0x5b6   : > { %757 = vrot.lane.b32.xlu0 %v1646_v16, %s1309_s23  ;;  %759 = vrot.lane.b32.xlu1 %v748_v17, %s1309_s23  ;;  %v536_v17 = vsub.f32 %v534_v13, %v535_v14 }
 0x628   : > { %v758_v19 = vpop.permute.xlu0 %757  ;;  %v760_v20 = vpop.permute.xlu1 %759 }
 0x629   : > { %v1655_v21 = vsel %vm617_vm1, %v760_v20, %v758_v19  ;;  %v761_v22 = vsel %vm617_vm1, %v758_v19, %v760_v20  ;;  %v537_v19 = vmul.f32 1.442695, %v536_v17 }
 0x62a   : > { %770 = vrot.lane.b32.xlu0 %v1655_v21, %s1309_s23  ;;  %772 = vrot.lane.b32.xlu1 %v761_v22, %s1309_s23 }
 0x62b   : > { %1199 = vpow2.f32 %v537_v19 }
 0x635   : > { %v1200_v20 = vpop.eup %1199 }
 0x636   : > { %v540_v22 = vsel %vm539_vm3, %v1200_v20, 0.0 }
 0x69c   : > { %v771_v38 = vpop.permute.xlu0 %770  ;;  %v773_v39 = vpop.permute.xlu1 %772 }
 0x69d   : > { %v1683_v42 = vsel %vm617_vm1, %v773_v39, %v771_v38  ;;  %v774_v43 = vsel %vm617_vm1, %v771_v38, %v773_v39 }
 0x69e   : > { %783 = vrot.lane.b32.xlu0 %v1683_v42, %s1309_s23  ;;  %785 = vrot.lane.b32.xlu1 %v774_v43, %s1309_s23 }
 0x6a2   : > { %1106 = vperm.xlu1 %1104, %v1105_v51   ;;  %1100 = vperm.xlu0 %1098, %v1099_v52  }
 0x6a6   : > { %1111 = vperm.xlu1 %1104, %v1110_v61   ;;  %1116 = vperm.xlu0 %1098, %v1115_v63  }
 0x6aa   : > { %1121 = vperm.xlu1 %1104, %v1120_v5   ;;  %1126 = vperm.xlu0 %1098, %v1125_v45  }
 0x6ae   : > { %1131 = vperm.xlu1 %1104, %v1130_v10  }
 0x6b2   : > { %791 = vperm.xlu1 %1104, %v991_v15  }
 0x6b6   : > { %803 = vperm.xlu1 %1104, %v992_v18  }
 0x6c9   : > { %541 = vadd.xlane.f32.xlu0 %v540_v22 }
 0x710   : > { %v784_v23 = vpop.permute.xlu0 %783  ;;  %v786_v24 = vpop.permute.xlu1 %785 }
 0x711   : > { %v788_v25 = vsel %vm617_vm1, %v786_v24, %v784_v23  ;;  %v787_v26 = vsel %vm617_vm1, %v784_v23, %v786_v24 }
 0x712   : > { %796 = vrot.lane.b32.xlu1 %v788_v25, %s1309_s23 }
 0x716   : > { %798 = vrot.lane.b32.xlu1 %v787_v26, %s1309_s23 }
 0x721   : > { %v1101_v27 = vpop.permute.xlu0 %1100  ;;  %v1107_v30 = vpop.permute.xlu1 %1106 }
 0x722   : > { %v1103_v28 = vunpack.i.h.bf16 %v1101_v27  ;;  %v1102_v29 = vunpack.i.l.bf16 %v1101_v27  ;;  %v1108_v34 = vunpack.i.l.bf16 %v1107_v30  ;;  %v1109_v37 = vunpack.i.h.bf16 %v1107_v30  ;;  %v817_v27 = vld [vmem:[%s262_s1] sm:$0x1] }
 0x723   : > { %v818_v30 = vmul.f32 0.01, %v817_v27 }
 0x724   : > { %v625_v31 = vmul.f32 %v1103_v28, %v1556_v40  ;;  %v612_v32 = vmul.f32 %v1102_v29, %v1548_v36  ;;  %v638_v38 = vmul.f32 %v1108_v34, %v1565_v46  ;;  %v651_v43 = vmul.f32 %v1109_v37, %v1574_v50 }
 0x725   : > { %v1112_v39 = vpop.permute.xlu1 %1111  ;;  %v1117_v52 = vpop.permute.xlu0 %1116 }
 0x726   : > { %v626_v35 = vadd.f32 %v625_v31, %v612_v32  ;;  %v1113_v47 = vunpack.i.l.bf16 %v1112_v39  ;;  %v1114_v49 = vunpack.i.h.bf16 %v1112_v39  ;;  %v1118_v55 = vunpack.i.l.bf16 %v1117_v52 }
 0x727   : > { %v1119_v56 = vunpack.i.h.bf16 %v1117_v52 }
 0x728   : > { %v639_v41 = vadd.f32 %v638_v38, %v626_v35  ;;  %v664_v51 = vmul.f32 %v1113_v47, %v1583_v54  ;;  %v677_v40 = vmul.f32 %v1114_v49, %v1592_v58  ;;  %v690_v57 = vmul.f32 %v1118_v55, %v1601_v62 }
 0x729   : > { %v1122_v59 = vpop.permute.xlu1 %1121  ;;  %v703_v60 = vmul.f32 %v1119_v56, %v1610_v2  ;;  %v1127_v1 = vpop.permute.xlu0 %1126 }
 0x72a   : > { %v652_v48 = vadd.f32 %v651_v43, %v639_v41  ;;  %v1123_v61 = vunpack.i.l.bf16 %v1122_v59  ;;  %v1124_v63 = vunpack.i.h.bf16 %v1122_v59  ;;  %v1128_v4 = vunpack.i.l.bf16 %v1127_v1 }
 0x72b   : > { %v1129_v45 = vunpack.i.h.bf16 %v1127_v1 }
 0x72c   : > { %v665_v53 = vadd.f32 %v664_v51, %v652_v48  ;;  %v716_v0 = vmul.f32 %v1123_v61, %v1619_v44  ;;  %v729_v3 = vmul.f32 %v1124_v63, %v1628_v8  ;;  %v742_v6 = vmul.f32 %v1128_v4, %v1637_v12 }
 0x72d   : > { %v1132_v5 = vpop.permute.xlu1 %1131  ;;  %v755_v7 = vmul.f32 %v1129_v45, %v1646_v16 }
 0x72e   : > { %v678_v36 = vadd.f32 %v677_v40, %v665_v53  ;;  %v1133_v9 = vunpack.i.l.bf16 %v1132_v5  ;;  %v1134_v11 = vunpack.i.h.bf16 %v1132_v5 }
 0x730   : > { %v691_v46 = vadd.f32 %v690_v57, %v678_v36  ;;  %v768_v13 = vmul.f32 %v1133_v9, %v1655_v21  ;;  %v781_v8 = vmul.f32 %v1134_v11, %v1683_v42 }
 0x731   : > { %v792_v2 = vpop.permute.xlu1 %791 }
 0x732   : > { %v704_v50 = vadd.f32 %v703_v60, %v691_v46  ;;  %v794_v18 = vmul.f32 %v792_v2, %v788_v25 }
 0x734   : > { %v717_v54 = vadd.f32 %v716_v0, %v704_v50 }
 0x735   : > { %v804_v44 = vpop.permute.xlu1 %803 }
 0x736   : > { %v730_v58 = vadd.f32 %v729_v3, %v717_v54 }
 0x738   : > { %v743_v62 = vadd.f32 %v742_v6, %v730_v58 }
 0x73a   : > { %v756_v10 = vadd.f32 %v755_v7, %v743_v62 }
 0x73c   : > { %v769_v14 = vadd.f32 %v768_v13, %v756_v10 }
 0x73e   : > { %v782_v17 = vadd.f32 %v781_v8, %v769_v14 }
 0x740   : > { %v795_v20 = vadd.f32 %v794_v18, %v782_v17 }
 0x756   : > { %v542_v22 = vpop.xlane.xlu0 %541 }
 0x757   : > { %1201 = vrcp.f32 %v542_v22 }
 0x761   : > { %v1202_v25 = vpop.eup %1201 }
 0x784   : > { %v797_v15 = vpop.permute.xlu1 %796 }
 0x788   : > { %v799_v19 = vpop.permute.xlu1 %798 }
 0x789   : > { %v800_v12 = vsel %vm617_vm1, %v799_v19, %v797_v15  ;;  %vm820_vm1 = vcmask 1040384  }
 0x78a   : > { %v806_v16 = vmul.f32 %v804_v44, %v800_v12 }
 0x78c   : > { %v807_v23 = vadd.f32 %v806_v16, %v795_v20 }
 0x78e   : > { %v808_v24 = vrot.slane %v807_v23, 4 }
 0x790   : > { %v809_v26 = vadd.f32 %v808_v24, %v807_v23 }
 0x792   : > { %v810_v21 = vrot.slane %v809_v26, 2 }
 0x794   : > { %v811_v42 = vadd.f32 %v810_v21, %v809_v26 }
 0x796   : > { %v812_v28 = vrot.slane %v811_v42, 1 }
 0x798   : > { %v813_v29 = vadd.f32 %v812_v28, %v811_v42 }
 0x79a   : > { %v816_v33 = vmul.f32 %v1202_v25, %v813_v29 }
 0x79c   : > { %v819_v31 = vadd.f32 %v818_v30, %v816_v33 }
 0x79e   : > { %v831_v32 = vsel %vm820_vm1, %v819_v31, -inf  ;;  %v821_v34 = vsel %vm820_vm1, %v819_v31, inf }
 0x79f   : > { %832 = vmax.xlane.f32.xlu0 %v831_v32  ;;  %822 = vmin.xlane.f32.xlu1 %v821_v34 }
 0x82c   : > { %v833_v35 = vpop.xlane.xlu0 %832  ;;  %v823_v37 = vpop.xlane.xlu1 %822 }
 0x82d   : > { %v834_v38 = vrot.slane %v833_v35, 4  ;;  %v824_v39 = vrot.slane %v823_v37, 4 }
 0x82f   : > { %v835_v41 = vmax.f32 %v833_v35, %v834_v38  ;;  %v825_v43 = vmin.f32 %v823_v37, %v824_v39 }
 0x831   : > { %v836_v47 = vrot.slane %v835_v41, 2  ;;  %v826_v48 = vrot.slane %v825_v43, 2 }
 0x833   : > { %v837_v49 = vmax.f32 %v835_v41, %v836_v47  ;;  %v827_v51 = vmin.f32 %v825_v43, %v826_v48 }
 0x835   : > { %v828_v52 = vrot.slane %v827_v51, 1  ;;  %v838_v53 = vrot.slane %v837_v49, 1 }
 0x837   : > { %v829_v40 = vmin.f32 %v827_v51, %v828_v52  ;;  %v839_v55 = vmax.f32 %v837_v49, %v838_v53 }
 0x839   : > { %1029 = vpush %v829_v40 }
 0x83a   : > { %1031 = vpush %v839_v55 }
 0x86a   : > { %s1030_s25 = spop %1029 }
 0x86b   : > { %s1032_s16 = spop %1031  ;;  %v841_v57 = vstv %s1030_s25 }
 0x86c   : > { %s843_s2 = ssub.f32 %s1032_s16, %s1030_s25  ;;  %v842_v59 = vsub.f32 %v819_v31, %v841_v57 }
 0x86e   : > { %v844_v36 = vstv %s843_s2 }
 0x86f   : > { %1203 = vrcp.f32 %v844_v36 }
 0x879   : > { %v1204_v56 = vpop.eup %1203 }
 0x87a   : > { %1033 = vpush %v1204_v56 }
 0x8ab   : > { %s1034_s23 = spop %1033 }
 0x8ac   : > { %v847_v46 = vstv %s1034_s23 }
 0x8ad   : > { %v848_v60 = vmul.f32 %v847_v46, %v842_v59 }
 0x8af   : > { %849 = vst [vmem:[%s254_s17] sm:$0x1] %v848_v60 }
 0x8b0   : > { %1248 = shalt.err (!%p1245_p2)
}
 0x8b1   : > { %s1249_s6 = scalar_lea.hbm %s1732_s12, 16  ;;  %s1253_s25 = scalar_lea.hbm %s1779_s5, 32 }
 0x8b2   : > { %p1250_p3 = scmp.ne.s32.totalorder %s1732_s12, %s1249_s6  ;;  %p1254_p5 = scmp.lt.u32.totalorder %s1732_s12, %s1779_s5 }
 0x8b3   : > { %p1255_p6 = scmp.lt.u32.totalorder %s1253_s25, %s1249_s6  ;;  %p1257_p12 = scmp.lt.u32.totalorder %s1249_s6, %s1732_s12 }
 0x8b4   : > { %p1251_p4 = pnand %p1250_p3, %p1796_p0 }
 0x8b5   : > { %p1256_p10 = por %p1255_p6, %p1254_p5 }
 0x8b6   : > { %p1252_p9 = pneg %p1251_p4 }
 0x8b7   : > { %p1258_p7 = por %p1257_p12, %p1256_p10 }
 0x8b9   : > { %p1259_p8 = pnand %p1258_p7, %p1252_p9 }
 0x8bb   : > { %1262 = shalt.err (!%p1259_p8)
}
 0x8bc   : > { %1043 = dma.vmem_to_hbm [thread:$0]  (%p1796_p0), %s1734_s7, 16, %s1732_s12, %s851_s14  }
 0x8bd PF: > { %p1060_p11 = scmp.ge.s32.totalorder %s1305_s21, 2  ;;  %s875_s8 = sand.u32 1, %s1293_s18  }
 0x8be   : > { %p1797_p13 = scmp.ne.s32.totalorder %s1786_s29, 0  ;;  %s876_s15 = scalar_lea.sflag [#allocation3], %s875_s8 }
 0x8c0   : > { %p1053_p1 = pnand %p1060_p11, %p1797_p13 }
 0x8c2   : > { %1288 = dma.done.wait (!%p1053_p1), %s876_s15, 16  }
 0x8c3   : > { %1290 = vsyncadd (!%p1053_p1), %s876_s15, 4294967280  ;;  %p17_p2 = scmp.ge.s32.totalorder %s1368_s24, 4   ;;  %s1798_s18 = smov %s1297_s19 }
 0x8c4   : > { %s1799_s19 = smov %s1301_s20  ;;  %s1800_s20 = smov %s1379_s27 }
 0x8c5   : > { %s1801_s21 = smov %s1368_s24  ;;  %19 = sbr.rel (!%p17_p2) target bundleno = 8 (0x8), region = 87 }
 0x8cc   :  { %880 = vsyncpa [#allocation3], 1 }
 0x8cd   :  { %882 = vsyncpa [#allocation3 + $0x1], 1 }
 0x8ce   :  { %883 = vsyncpa [#allocation4], 1 }
 0x8cf   :  { %885 = vsyncpa [#allocation4 + $0x1], 1 }
 0x8d0   :  { %886 = vsyncpa [#allocation6], 1 }

</bundles_post_ra>
